<compile_context>
chip_gen: v5e
topology: v5e:2x2
jax: 0.10.0
libtpu: 0.0.40
codegen_flags: <defaults>
</compile_context>

<pallas_src>
import functools
import math

import jax
import jax.numpy as jnp
from jax.experimental import pallas as pl
from jax.experimental.pallas import tpu as pltpu

F32 = jnp.float32
BF16 = jnp.bfloat16
LN_EPS = 1e-12   # HF ViT layer_norm_eps
BN_EPS = 1e-5    # torch BatchNorm1d default
PAD_N = 128      # classifier logits padded to a full lane width


def _vmem():
    # whole-array block resident in VMEM (shapes here are tiny)
    return pl.BlockSpec(memory_space=pltpu.MemorySpace.VMEM)


# ----------------------------- embedding kernel -----------------------------

def embed_kernel(p_ref, w_ref, b_ref, cls_ref, pos_ref, o_ref, *, N, Sp):
    # One grid step == one batch element.  Patch-embedding matmul (bf16 in,
    # f32 accumulate) + [CLS] prepend + position embedding, written with
    # direct sliced stores (no concatenate), pad rows zeroed.
    emb = jnp.dot(p_ref[...], w_ref[...], preferred_element_type=F32) + b_ref[...]
    o_ref[pl.ds(0, 1), :] = cls_ref[...] + pos_ref[pl.ds(0, 1), :]
    o_ref[pl.ds(1, N), :] = emb + pos_ref[pl.ds(1, N), :]
    pad = Sp - (N + 1)
    if pad > 0:
        o_ref[pl.ds(N + 1, pad), :] = jnp.zeros((pad, emb.shape[-1]), F32)


def embed(patches, params, *, B, N, Sp, D):
    CPP = patches.shape[-1]
    S = params["pos_emb"].shape[0]
    return pl.pallas_call(
        functools.partial(embed_kernel, N=N, Sp=Sp),
        grid=(B,),
        in_specs=[
            pl.BlockSpec((None, N, CPP), lambda b: (b, 0, 0)),
            pl.BlockSpec((CPP, D), lambda b: (0, 0)),
            pl.BlockSpec((1, D), lambda b: (0, 0)),
            pl.BlockSpec((1, D), lambda b: (0, 0)),
            pl.BlockSpec((S, D), lambda b: (0, 0)),
        ],
        out_specs=pl.BlockSpec((None, Sp, D), lambda b: (b, 0, 0)),
        out_shape=jax.ShapeDtypeStruct((B, Sp, D), F32),
        compiler_params=pltpu.CompilerParams(dimension_semantics=("parallel",)),
    )(patches, params["patch_w"], params["patch_b"],
      params["cls_token"], params["pos_emb"])


# ------------------------------ encoder kernel ------------------------------

def encoder_kernel(x_ref, ln1g_ref, ln1b_ref, qkvw_ref, qkvb_ref,
                   ow_ref, ob_ref, ln2g_ref, ln2b_ref,
                   fc1w_ref, fc1b_ref, fc2w_ref, fc2b_ref,
                   cls_ref, h_ref,
                   *, S, Sp, nh, hd, scale):
    # grid = (batch, layer); the (Sp, D) hidden state lives in a VMEM scratch
    # for all layers of one batch element; only the CLS row is emitted.
    @pl.when(pl.program_id(1) == 0)
    def _():
        h_ref[...] = x_ref[...]

    x = h_ref[...]                                   # (Sp, D) f32
    D = x.shape[-1]

    def ln(v, g, b):
        mu = jnp.mean(v, axis=-1, keepdims=True)
        vc = v - mu
        var = jnp.mean(vc * vc, axis=-1, keepdims=True)
        return vc * jax.lax.rsqrt(var + LN_EPS) * g + b

    # ----- self-attention -----
    hn = ln(x, ln1g_ref[...], ln1b_ref[...])
    qkv = jnp.dot(hn.astype(BF16), qkvw_ref[...],
                  preferred_element_type=F32) + qkvb_ref[...]       # (Sp, 3D)

    qs, ks, vs = [], [], []
    for h in range(nh):
        c = h * hd
        qs.append(qkv[:, c:c + hd])
        ks.append(qkv[:, D + c:D + c + hd])
        vs.append(qkv[:, 2 * D + c:2 * D + c + hd])
    q = (jnp.stack(qs, axis=0) * scale).astype(BF16)                # (nh, Sp, hd)
    k = jnp.stack(ks, axis=0).astype(BF16)
    v = jnp.stack(vs, axis=0).astype(BF16)

    s = jnp.einsum('hqd,hkd->hqk', q, k, preferred_element_type=F32)  # (nh,Sp,Sp)
    if Sp > S:   # mask padded key columns
        key_ids = jax.lax.broadcasted_iota(jnp.int32, (1, 1, Sp), 2)
        s = s + jnp.where(key_ids < S, 0.0, -1e30)

    # single batched softmax over all heads
    m = jnp.max(s, axis=-1, keepdims=True)
    p = jnp.exp(s - m)
    p = p * pl.reciprocal(jnp.sum(p, axis=-1, keepdims=True), approx=True)

    ctx = jnp.einsum('hqk,hkd->hqd', p.astype(BF16), v,
                     preferred_element_type=F32)                    # (nh, Sp, hd)
    ctx = jnp.concatenate([ctx[h] for h in range(nh)], axis=-1)     # (Sp, D)

    x = x + jnp.dot(ctx.astype(BF16), ow_ref[...],
                    preferred_element_type=F32) + ob_ref[...]

    # ----- MLP -----
    h2 = ln(x, ln2g_ref[...], ln2b_ref[...])
    h2 = jnp.dot(h2.astype(BF16), fc1w_ref[...],
                 preferred_element_type=F32) + fc1b_ref[...]
    # TODO(synk): exact erf-GELU not used; tanh approximation instead.
    h2 = jax.nn.gelu(h2, approximate=True)
    h2 = jnp.dot(h2.astype(BF16), fc2w_ref[...],
                 preferred_element_type=F32) + fc2b_ref[...]
    x = x + h2

    h_ref[...] = x
    cls_ref[...] = x[0:1, :]        # only the CLS row ever leaves the kernel


def encode(x0, params, cfg, *, B, S, Sp):
    D, I, L = cfg["hidden"], cfg["intermediate"], cfg["layers"]
    nh = cfg["heads"]
    hd = D // nh
    lw = params["layers"]

    def xmap(b, l):      # per-batch block, constant across layers
        return (b, 0, 0)

    def wmap(b, l):      # stacked per-layer weights, leading dim squeezed
        return (l, 0, 0)

    in_specs = [
        pl.BlockSpec((None, Sp, D), xmap),           # x0
        pl.BlockSpec((None, 1, D), wmap),            # ln1_g
        pl.BlockSpec((None, 1, D), wmap),            # ln1_b
        pl.BlockSpec((None, D, 3 * D), wmap),        # qkv_w (fused q|k|v, bf16)
        pl.BlockSpec((None, 1, 3 * D), wmap),        # qkv_b
        pl.BlockSpec((None, D, D), wmap),            # o_w (bf16)
        pl.BlockSpec((None, 1, D), wmap),            # o_b
        pl.BlockSpec((None, 1, D), wmap),            # ln2_g
        pl.BlockSpec((None, 1, D), wmap),            # ln2_b
        pl.BlockSpec((None, D, I), wmap),            # fc1_w (bf16)
        pl.BlockSpec((None, 1, I), wmap),            # fc1_b
        pl.BlockSpec((None, I, D), wmap),            # fc2_w (bf16)
        pl.BlockSpec((None, 1, D), wmap),            # fc2_b
    ]
    return pl.pallas_call(
        functools.partial(encoder_kernel, S=S, Sp=Sp, nh=nh, hd=hd,
                          scale=1.0 / math.sqrt(hd)),
        grid=(B, L),
        in_specs=in_specs,
        out_specs=pl.BlockSpec((None, 1, D), xmap),
        out_shape=jax.ShapeDtypeStruct((B, 1, D), F32),
        scratch_shapes=[pltpu.VMEM((Sp, D), F32)],   # resident hidden state
        compiler_params=pltpu.CompilerParams(
            dimension_semantics=("parallel", "arbitrary"),
            vmem_limit_bytes=64 * 1024 * 1024),
    )(x0,
      lw["ln1_g"], lw["ln1_b"], lw["qkv_w"], lw["qkv_b"],
      lw["o_w"], lw["o_b"], lw["ln2_g"], lw["ln2_b"],
      lw["fc1_w"], lw["fc1_b"], lw["fc2_w"], lw["fc2_b"])


# ----------------------------- multitask head --------------------------------

def head_kernel(x_ref, lnfg_ref, lnfb_ref, clsw_ref, clsb_ref,
                sg_ref, sb_ref, sm_ref, sv_ref,
                fw_ref, fb_ref, iw_ref, ib_ref,
                pg_ref, pb_ref, pm_ref, pv_ref,
                fcw_ref, fcb_ref, icw_ref, icb_ref,
                lab_ref, ing_ref,
                flog_ref, ilog_ref, floss_ref, iloss_ref,
                *, num_labels, num_ingres):
    cls = x_ref[...]                                            # (B, D) CLS rows

    # final encoder LayerNorm (per-token, so applying it to the CLS rows only
    # is numerically identical to normalizing the full sequence first)
    mu = jnp.mean(cls, axis=-1, keepdims=True)
    xc = cls - mu
    var = jnp.mean(xc * xc, axis=-1, keepdims=True)
    cls = xc * jax.lax.rsqrt(var + LN_EPS) * lnfg_ref[...] + lnfb_ref[...]

    # VitModel.classifier -> shared representation
    share = jnp.dot(cls, clsw_ref[...], preferred_element_type=F32) + clsb_ref[...]

    # shapredbn (eval) -> tanh -> dropout(identity)
    share = (share - sm_ref[...]) * jax.lax.rsqrt(sv_ref[...] + BN_EPS) * sg_ref[...] + sb_ref[...]
    share = jnp.tanh(share)

    fh = jnp.dot(share, fw_ref[...], preferred_element_type=F32) + fb_ref[...]
    ih = jnp.dot(share, iw_ref[...], preferred_element_type=F32) + ib_ref[...]

    def private_bn_tanh(h):
        h = (h - pm_ref[...]) * jax.lax.rsqrt(pv_ref[...] + BN_EPS) * pg_ref[...] + pb_ref[...]
        return jnp.tanh(h)

    fh = private_bn_tanh(fh)
    ih = private_bn_tanh(ih)

    # classifier weights are zero-padded to PAD_N lanes -> lane-dense stores
    flog = jnp.dot(fh, fcw_ref[...], preferred_element_type=F32) + fcb_ref[...]  # (B, PAD_N)
    ilog = jnp.dot(ih, icw_ref[...], preferred_element_type=F32) + icb_ref[...]  # (B, PAD_N)
    flog_ref[...] = flog
    ilog_ref[...] = ilog

    # CrossEntropyLoss (mean over batch) on the valid columns only
    fl = flog[:, :num_labels]
    m = jnp.max(fl, axis=-1, keepdims=True)
    lse = m + jnp.log(jnp.sum(jnp.exp(fl - m), axis=-1, keepdims=True))   # (B,1)
    ids = jax.lax.broadcasted_iota(jnp.int32, fl.shape, 1)
    onehot = (ids == lab_ref[...]).astype(F32)
    picked = jnp.sum(fl * onehot, axis=-1, keepdims=True)                 # (B,1)
    per = lse - picked
    floss_ref[...] = jnp.sum(per, axis=0, keepdims=True) / per.shape[0]

    # BCEWithLogitsLoss (mean over all valid elements), numerically stable
    il = ilog[:, :num_ingres]
    y = ing_ref[...]
    bce = jnp.maximum(il, 0.0) - il * y + jnp.log(1.0 + jnp.exp(-jnp.abs(il)))
    tot = jnp.sum(jnp.sum(bce, axis=1, keepdims=True), axis=0, keepdims=True)
    iloss_ref[...] = tot / (bce.shape[0] * bce.shape[1])


def multitask_head(cls, labels, ingres, params, cfg, *, B):
    nl, ni = cfg["num_labels"], cfg["num_ingres"]
    outs = pl.pallas_call(
        functools.partial(head_kernel, num_labels=nl, num_ingres=ni),
        out_shape=(
            jax.ShapeDtypeStruct((B, PAD_N), F32),
            jax.ShapeDtypeStruct((B, PAD_N), F32),
            jax.ShapeDtypeStruct((1, 1), F32),
            jax.ShapeDtypeStruct((1, 1), F32),
        ),
        in_specs=[_vmem()] * 23,
        out_specs=(_vmem(), _vmem(), _vmem(), _vmem()),
    )(cls,
      params["ln_f_g"], params["ln_f_b"],
      params["cls_w"], params["cls_b"],
      params["shapredbn_g"], params["shapredbn_b"],
      params["shapredbn_m"], params["shapredbn_v"],
      params["foodfc_w"], params["foodfc_b"],
      params["ingrefc_w"], params["ingrefc_b"],
      params["privatebn_g"], params["privatebn_b"],
      params["privatebn_m"], params["privatebn_v"],
      params["foodcls_w"], params["foodcls_b"],
      params["ingrecls_w"], params["ingrecls_b"],
      labels.reshape(B, 1).astype(jnp.int32),
      ingres.astype(F32))
    flog_pad, ilog_pad, floss, iloss = outs
    return flog_pad[:, :nl], ilog_pad[:, :ni], floss[0, 0], iloss[0, 0]


# ----------------------------- forward assembly -----------------------------

def vit_multitask_forward(params, pixel_values, labels, ingres, cfg):
    B = pixel_values.shape[0]
    C, P, D = cfg["channels"], cfg["patch"], cfg["hidden"]
    Hp = pixel_values.shape[2] // P
    Wp = pixel_values.shape[3] // P
    N = Hp * Wp
    S = N + 1
    Sp = ((S + 7) // 8) * 8            # sequence padded to a sublane multiple

    # patch-embedding conv (kernel==stride==P) as patch-extract (glue) + matmul.
    # NOTE: a torch Conv2d weight must be permuted to (C,P,P)->flatten order to
    # match this (c, ph, pw) flattening.
    patches = pixel_values.reshape(B, C, Hp, P, Wp, P)
    patches = patches.transpose(0, 2, 4, 1, 3, 5).reshape(B, N, C * P * P)
    patches = patches.astype(BF16)

    x = embed(patches, params, B=B, N=N, Sp=Sp, D=D)     # (B, Sp, D)
    cls = encode(x, params, cfg, B=B, S=S, Sp=Sp)        # (B, 1, D) CLS rows
    cls = cls.reshape(B, D)                              # wrapper-side glue
    foodlogits, ingrelogits, foodloss, ingreloss = multitask_head(
        cls, labels, ingres, params, cfg, B=B)
    return foodloss, ingreloss, foodlogits, ingrelogits


# --------------------------- deterministic params ---------------------------

def init_params(key, cfg):
    D, C, P = cfg["hidden"], cfg["channels"], cfg["patch"]
    I, L, S = cfg["intermediate"], cfg["layers"], cfg["seq"]
    shared = D
    private = D // 2
    nl, ni = cfg["num_labels"], cfg["num_ingres"]

    keys = iter(jax.random.split(key, 512))

    def w(shape, scale=0.02):
        return (scale * jax.random.normal(next(keys), shape)).astype(F32)

    def zeros(shape):
        return jnp.zeros(shape, F32)

    def ones(shape):
        return jnp.ones(shape, F32)

    def pad_lanes(a, n):
        return jnp.pad(a, [(0, 0)] * (a.ndim - 1) + [(0, n - a.shape[-1])])

    params = dict(
        patch_w=w((C * P * P, D)).astype(BF16), patch_b=zeros((1, D)),
        cls_token=w((1, D)), pos_emb=w((S, D)),
        ln_f_g=ones((1, D)), ln_f_b=zeros((1, D)),
        cls_w=w((D, shared)), cls_b=zeros((1, shared)),
        shapredbn_g=ones((1, shared)) + w((1, shared), 0.1),
        shapredbn_b=w((1, shared), 0.1),
        shapredbn_m=w((1, shared), 0.1),
        shapredbn_v=ones((1, shared)) + jnp.abs(w((1, shared), 0.1)),
        foodfc_w=w((shared, private)), foodfc_b=zeros((1, private)),
        ingrefc_w=w((shared, private)), ingrefc_b=zeros((1, private)),
        privatebn_g=ones((1, private)) + w((1, private), 0.1),
        privatebn_b=w((1, private), 0.1),
        privatebn_m=w((1, private), 0.1),
        privatebn_v=ones((1, private)) + jnp.abs(w((1, private), 0.1)),
        # classifier weights/biases zero-padded to 128 lanes (lane-dense stores)
        foodcls_w=pad_lanes(w((private, nl)), PAD_N),
        foodcls_b=zeros((1, PAD_N)),
        ingrecls_w=pad_lanes(w((private, ni)), PAD_N),
        ingrecls_b=zeros((1, PAD_N)),
    )

    def stack(make, dtype=F32):
        return jnp.stack([make() for _ in range(L)], axis=0).astype(dtype)

    params["layers"] = dict(
        ln1_g=stack(lambda: ones((1, D))),
        ln1_b=stack(lambda: zeros((1, D))),
        qkv_w=stack(lambda: w((D, 3 * D)), BF16),     # fused [q | k | v] weight
        qkv_b=stack(lambda: zeros((1, 3 * D))),
        o_w=stack(lambda: w((D, D)), BF16),
        o_b=stack(lambda: zeros((1, D))),
        ln2_g=stack(lambda: ones((1, D))),
        ln2_b=stack(lambda: zeros((1, D))),
        fc1_w=stack(lambda: w((D, I)), BF16),
        fc1_b=stack(lambda: zeros((1, I))),
        fc2_w=stack(lambda: w((I, D)), BF16),
        fc2_b=stack(lambda: zeros((1, D))),
    )
    return params


if __name__ == "__main__":
    cfg = dict(channels=3, image=16, patch=8, hidden=32, heads=2,
               intermediate=64, layers=2, num_labels=10, num_ingres=12)
    cfg["seq"] = (cfg["image"] // cfg["patch"]) ** 2 + 1   # patches + CLS

    key = jax.random.PRNGKey(0)
    kp, kx, kl, ki = jax.random.split(key, 4)
    params = init_params(kp, cfg)

    B = 2
    pixel_values = jax.random.normal(
        kx, (B, cfg["channels"], cfg["image"], cfg["image"]), F32)
    labels = jax.random.randint(kl, (B,), 0, cfg["num_labels"], dtype=jnp.int32)
    ingres = (jax.random.uniform(ki, (B, cfg["num_ingres"])) < 0.3).astype(F32)

    fwd = jax.jit(functools.partial(vit_multitask_forward, cfg=cfg))
    foodloss, ingreloss, foodlogits, ingrelogits = fwd(
        params, pixel_values, labels, ingres)
    jax.block_until_ready((foodloss, ingreloss, foodlogits, ingrelogits))

    assert foodlogits.shape == (B, cfg["num_labels"])
    assert ingrelogits.shape == (B, cfg["num_ingres"])
    assert bool(jnp.isfinite(foodloss)) and bool(jnp.isfinite(ingreloss))
    assert bool(jnp.all(jnp.isfinite(foodlogits)))
    assert bool(jnp.all(jnp.isfinite(ingrelogits)))
    print("KERNEL_OK")
</pallas_src>

<mosaic_0001>
module attributes {stable_mosaic.version = 11 : i64} {
  func.func @embed_kernel(%arg0: i32, %arg1: memref<1x4x192xbf16, #tpu.memory_space<vmem>>, %arg2: memref<192x32xbf16, #tpu.memory_space<vmem>>, %arg3: memref<1x32xf32, #tpu.memory_space<vmem>>, %arg4: memref<1x32xf32, #tpu.memory_space<vmem>>, %arg5: memref<5x32xf32, #tpu.memory_space<vmem>>, %arg6: memref<1x8x32xf32, #tpu.memory_space<vmem>>) attributes {dimension_semantics = [#tpu.dimension_semantics<parallel>], iteration_bounds = array<i64: 2>, scalar_prefetch = 0 : i64, scratch_operands = 0 : i64, tpu.core_type = #tpu.core_type<tc>, window_params = [{transform_indices = @transform_0, window_bounds = array<i64: 1, 4, 192>}, {pipeline_mode = #tpu.pipeline_mode<synchronous>, transform_indices = @transform_1, window_bounds = array<i64: 192, 32>}, {pipeline_mode = #tpu.pipeline_mode<synchronous>, transform_indices = @transform_2, window_bounds = array<i64: 1, 32>}, {pipeline_mode = #tpu.pipeline_mode<synchronous>, transform_indices = @transform_3, window_bounds = array<i64: 1, 32>}, {pipeline_mode = #tpu.pipeline_mode<synchronous>, transform_indices = @transform_4, window_bounds = array<i64: 5, 32>}, {transform_indices = @transform_5, window_bounds = array<i64: 1, 8, 32>}]} {
    %c0 = arith.constant 0 : index
    %c0_0 = arith.constant 0 : index
    %c0_1 = arith.constant 0 : index
    %0 = vector.load %arg1[%c0, %c0_0, %c0_1] : memref<1x4x192xbf16, #tpu.memory_space<vmem>>, vector<1x4x192xbf16>
    %1 = vector.shape_cast %0 : vector<1x4x192xbf16> to vector<4x192xbf16>
    %c0_2 = arith.constant 0 : index
    %c0_3 = arith.constant 0 : index
    %2 = vector.load %arg2[%c0_2, %c0_3] : memref<192x32xbf16, #tpu.memory_space<vmem>>, vector<192x32xbf16>
    %cst = arith.constant dense<0.000000e+00> : vector<4x32xf32>
    %3 = tpu.matmul %1, %2, %cst {dimension_numbers = #tpu.dot_dimension_numbers<[1], [0], [0], [1], [0, 0, 1, 1], [], []>} : vector<4x192xbf16>, vector<192x32xbf16>, vector<4x32xf32> -> vector<4x32xf32>
    %c0_4 = arith.constant 0 : index
    %c0_5 = arith.constant 0 : index
    %4 = vector.load %arg3[%c0_4, %c0_5] : memref<1x32xf32, #tpu.memory_space<vmem>>, vector<1x32xf32>
    %5 = vector.broadcast %4 : vector<1x32xf32> to vector<4x32xf32>
    %6 = arith.addf %3, %5 : vector<4x32xf32>
    %c0_6 = arith.constant 0 : index
    %c0_7 = arith.constant 0 : index
    %7 = vector.load %arg4[%c0_6, %c0_7] : memref<1x32xf32, #tpu.memory_space<vmem>>, vector<1x32xf32>
    %c0_8 = arith.constant 0 : index
    %c0_9 = arith.constant 0 : index
    %8 = vector.load %arg5[%c0_8, %c0_9] : memref<5x32xf32, #tpu.memory_space<vmem>>, vector<1x32xf32>
    %9 = arith.addf %7, %8 : vector<1x32xf32>
    %c0_10 = arith.constant 0 : index
    %c0_11 = arith.constant 0 : index
    %c0_12 = arith.constant 0 : index
    %10 = vector.load %arg6[%c0_10, %c0_11, %c0_12] : memref<1x8x32xf32, #tpu.memory_space<vmem>>, vector<1x1x32xf32>
    %11 = vector.shape_cast %10 : vector<1x1x32xf32> to vector<1x32xf32>
    %12 = vector.shape_cast %9 : vector<1x32xf32> to vector<1x1x32xf32>
    tpu.vector_store %arg6[%c0_10, %c0_11, %c0_12], %12 {strides = array<i32>} : memref<1x8x32xf32, #tpu.memory_space<vmem>>, vector<1x1x32xf32>,
    %c1 = arith.constant 1 : index
    %c0_13 = arith.constant 0 : index
    %13 = vector.load %arg5[%c1, %c0_13] : memref<5x32xf32, #tpu.memory_space<vmem>>, vector<4x32xf32>
    %14 = arith.addf %6, %13 : vector<4x32xf32>
    %c0_14 = arith.constant 0 : index
    %c1_15 = arith.constant 1 : index
    %c0_16 = arith.constant 0 : index
    %15 = vector.load %arg6[%c0_14, %c1_15, %c0_16] : memref<1x8x32xf32, #tpu.memory_space<vmem>>, vector<1x4x32xf32>
    %16 = vector.shape_cast %15 : vector<1x4x32xf32> to vector<4x32xf32>
    %17 = vector.shape_cast %14 : vector<4x32xf32> to vector<1x4x32xf32>
    tpu.vector_store %arg6[%c0_14, %c1_15, %c0_16], %17 {strides = array<i32>} : memref<1x8x32xf32, #tpu.memory_space<vmem>>, vector<1x4x32xf32>,
    %cst_17 = arith.constant 0.000000e+00 : f32
    %18 = vector.broadcast %cst_17 : f32 to vector<3x32xf32>
    %c0_18 = arith.constant 0 : index
    %c5 = arith.constant 5 : index
    %c0_19 = arith.constant 0 : index
    %19 = vector.load %arg6[%c0_18, %c5, %c0_19] : memref<1x8x32xf32, #tpu.memory_space<vmem>>, vector<1x3x32xf32>
    %20 = vector.shape_cast %19 : vector<1x3x32xf32> to vector<3x32xf32>
    %21 = vector.shape_cast %18 : vector<3x32xf32> to vector<1x3x32xf32>
    tpu.vector_store %arg6[%c0_18, %c5, %c0_19], %21 {strides = array<i32>} : memref<1x8x32xf32, #tpu.memory_space<vmem>>, vector<1x3x32xf32>,
    return
  }
  func.func @transform_0(%arg0: i32) -> (i32, i32, i32) {
    %c0_i32 = arith.constant 0 : i32
    %c0_i32_0 = arith.constant 0 : i32
    %c0_i32_1 = arith.constant 0 : i32
    return %arg0, %c0_i32, %c0_i32_0 : i32, i32, i32
  }
  func.func @transform_1(%arg0: i32) -> (i32, i32) {
    %c0_i32 = arith.constant 0 : i32
    %c0_i32_0 = arith.constant 0 : i32
    %c0_i32_1 = arith.constant 0 : i32
    return %c0_i32, %c0_i32_0 : i32, i32
  }
  func.func @transform_2(%arg0: i32) -> (i32, i32) {
    %c0_i32 = arith.constant 0 : i32
    %c0_i32_0 = arith.constant 0 : i32
    %c0_i32_1 = arith.constant 0 : i32
    return %c0_i32, %c0_i32_0 : i32, i32
  }
  func.func @transform_3(%arg0: i32) -> (i32, i32) {
    %c0_i32 = arith.constant 0 : i32
    %c0_i32_0 = arith.constant 0 : i32
    %c0_i32_1 = arith.constant 0 : i32
    return %c0_i32, %c0_i32_0 : i32, i32
  }
  func.func @transform_4(%arg0: i32) -> (i32, i32) {
    %c0_i32 = arith.constant 0 : i32
    %c0_i32_0 = arith.constant 0 : i32
    %c0_i32_1 = arith.constant 0 : i32
    return %c0_i32, %c0_i32_0 : i32, i32
  }
  func.func @transform_5(%arg0: i32) -> (i32, i32, i32) {
    %c0_i32 = arith.constant 0 : i32
    %c0_i32_0 = arith.constant 0 : i32
    %c0_i32_1 = arith.constant 0 : i32
    return %arg0, %c0_i32, %c0_i32_0 : i32, i32, i32
  }
}

module attributes {stable_mosaic.version = 11 : i64} {
  func.func @encoder_kernel(%arg0: i32, %arg1: i32, %arg2: memref<1x8x32xf32, #tpu.memory_space<vmem>>, %arg3: memref<1x1x32xf32, #tpu.memory_space<vmem>>, %arg4: memref<1x1x32xf32, #tpu.memory_space<vmem>>, %arg5: memref<1x32x96xbf16, #tpu.memory_space<vmem>>, %arg6: memref<1x1x96xf32, #tpu.memory_space<vmem>>, %arg7: memref<1x32x32xbf16, #tpu.memory_space<vmem>>, %arg8: memref<1x1x32xf32, #tpu.memory_space<vmem>>, %arg9: memref<1x1x32xf32, #tpu.memory_space<vmem>>, %arg10: memref<1x1x32xf32, #tpu.memory_space<vmem>>, %arg11: memref<1x32x64xbf16, #tpu.memory_space<vmem>>, %arg12: memref<1x1x64xf32, #tpu.memory_space<vmem>>, %arg13: memref<1x64x32xbf16, #tpu.memory_space<vmem>>, %arg14: memref<1x1x32xf32, #tpu.memory_space<vmem>>, %arg15: memref<1x1x32xf32, #tpu.memory_space<vmem>>, %arg16: memref<8x32xf32, #tpu.memory_space<vmem>>) attributes {dimension_semantics = [#tpu.dimension_semantics<parallel>, #tpu.dimension_semantics<arbitrary>], iteration_bounds = array<i64: 2, 2>, scalar_prefetch = 0 : i64, scratch_operands = 1 : i64, tpu.core_type = #tpu.core_type<tc>, window_params = [{transform_indices = @transform_0, window_bounds = array<i64: 1, 8, 32>}, {transform_indices = @transform_1, window_bounds = array<i64: 1, 1, 32>}, {transform_indices = @transform_2, window_bounds = array<i64: 1, 1, 32>}, {transform_indices = @transform_3, window_bounds = array<i64: 1, 32, 96>}, {transform_indices = @transform_4, window_bounds = array<i64: 1, 1, 96>}, {transform_indices = @transform_5, window_bounds = array<i64: 1, 32, 32>}, {transform_indices = @transform_6, window_bounds = array<i64: 1, 1, 32>}, {transform_indices = @transform_7, window_bounds = array<i64: 1, 1, 32>}, {transform_indices = @transform_8, window_bounds = array<i64: 1, 1, 32>}, {transform_indices = @transform_9, window_bounds = array<i64: 1, 32, 64>}, {transform_indices = @transform_10, window_bounds = array<i64: 1, 1, 64>}, {transform_indices = @transform_11, window_bounds = array<i64: 1, 64, 32>}, {transform_indices = @transform_12, window_bounds = array<i64: 1, 1, 32>}, {transform_indices = @transform_13, window_bounds = array<i64: 1, 1, 32>}]} {
    %c0_i32 = arith.constant 0 : i32
    %0 = arith.cmpi eq, %arg1, %c0_i32 : i32
    %1 = arith.extui %0 : i1 to i32
    %c0_i32_0 = arith.constant 0 : i32
    %2 = arith.cmpi ne, %1, %c0_i32_0 : i32
    scf.if %2 {
      %c0_67 = arith.constant 0 : index
      %c0_68 = arith.constant 0 : index
      %c0_69 = arith.constant 0 : index
      %150 = vector.load %arg2[%c0_67, %c0_68, %c0_69] : memref<1x8x32xf32, #tpu.memory_space<vmem>>, vector<1x8x32xf32>
      %151 = vector.shape_cast %150 : vector<1x8x32xf32> to vector<8x32xf32>
      %c0_70 = arith.constant 0 : index
      %c0_71 = arith.constant 0 : index
      %152 = vector.load %arg16[%c0_70, %c0_71] : memref<8x32xf32, #tpu.memory_space<vmem>>, vector<8x32xf32>
      tpu.vector_store %arg16[%c0_70, %c0_71], %151 {strides = array<i32>} : memref<8x32xf32, #tpu.memory_space<vmem>>, vector<8x32xf32>,
    } else {
    }
    %c0 = arith.constant 0 : index
    %c0_1 = arith.constant 0 : index
    %3 = vector.load %arg16[%c0, %c0_1] : memref<8x32xf32, #tpu.memory_space<vmem>>, vector<8x32xf32>
    %c0_2 = arith.constant 0 : index
    %c0_3 = arith.constant 0 : index
    %c0_4 = arith.constant 0 : index
    %4 = vector.load %arg3[%c0_2, %c0_3, %c0_4] : memref<1x1x32xf32, #tpu.memory_space<vmem>>, vector<1x1x32xf32>
    %5 = vector.shape_cast %4 : vector<1x1x32xf32> to vector<1x32xf32>
    %c0_5 = arith.constant 0 : index
    %c0_6 = arith.constant 0 : index
    %c0_7 = arith.constant 0 : index
    %6 = vector.load %arg4[%c0_5, %c0_6, %c0_7] : memref<1x1x32xf32, #tpu.memory_space<vmem>>, vector<1x1x32xf32>
    %7 = vector.shape_cast %6 : vector<1x1x32xf32> to vector<1x32xf32>
    %cst = arith.constant dense<0.000000e+00> : vector<8xf32>
    %8 = vector.multi_reduction <add>, %3, %cst [1] : vector<8x32xf32> to vector<8xf32>
    %9 = vector.shape_cast %8 : vector<8xf32> to vector<8x1xf32>
    %cst_8 = arith.constant 3.200000e+01 : f32
    %10 = vector.broadcast %cst_8 : f32 to vector<8x1xf32>
    %11 = arith.divf %9, %10 : vector<8x1xf32>
    %12 = vector.broadcast %11 : vector<8x1xf32> to vector<8x32xf32>
    %13 = arith.subf %3, %12 : vector<8x32xf32>
    %14 = arith.mulf %13, %13 : vector<8x32xf32>
    %cst_9 = arith.constant dense<0.000000e+00> : vector<8xf32>
    %15 = vector.multi_reduction <add>, %14, %cst_9 [1] : vector<8x32xf32> to vector<8xf32>
    %16 = vector.shape_cast %15 : vector<8xf32> to vector<8x1xf32>
    %cst_10 = arith.constant 3.200000e+01 : f32
    %17 = vector.broadcast %cst_10 : f32 to vector<8x1xf32>
    %18 = arith.divf %16, %17 : vector<8x1xf32>
    %cst_11 = arith.constant 9.99999996E-13 : f32
    %19 = vector.broadcast %cst_11 : f32 to vector<8x1xf32>
    %20 = arith.addf %18, %19 : vector<8x1xf32>
    %21 = math.rsqrt %20 : vector<8x1xf32>
    %22 = vector.broadcast %21 : vector<8x1xf32> to vector<8x32xf32>
    %23 = arith.mulf %13, %22 : vector<8x32xf32>
    %24 = vector.broadcast %5 : vector<1x32xf32> to vector<8x32xf32>
    %25 = arith.mulf %23, %24 : vector<8x32xf32>
    %26 = vector.broadcast %7 : vector<1x32xf32> to vector<8x32xf32>
    %27 = arith.addf %25, %26 : vector<8x32xf32>
    %28 = arith.truncf %27 : vector<8x32xf32> to vector<8x32xbf16>
    %c0_12 = arith.constant 0 : index
    %c0_13 = arith.constant 0 : index
    %c0_14 = arith.constant 0 : index
    %29 = vector.load %arg5[%c0_12, %c0_13, %c0_14] : memref<1x32x96xbf16, #tpu.memory_space<vmem>>, vector<1x32x96xbf16>
    %30 = vector.shape_cast %29 : vector<1x32x96xbf16> to vector<32x96xbf16>
    %cst_15 = arith.constant dense<0.000000e+00> : vector<8x96xf32>
    %31 = tpu.matmul %28, %30, %cst_15 {dimension_numbers = #tpu.dot_dimension_numbers<[1], [0], [0], [1], [0, 0, 1, 1], [], []>} : vector<8x32xbf16>, vector<32x96xbf16>, vector<8x96xf32> -> vector<8x96xf32>
    %c0_16 = arith.constant 0 : index
    %c0_17 = arith.constant 0 : index
    %c0_18 = arith.constant 0 : index
    %32 = vector.load %arg6[%c0_16, %c0_17, %c0_18] : memref<1x1x96xf32, #tpu.memory_space<vmem>>, vector<1x1x96xf32>
    %33 = vector.shape_cast %32 : vector<1x1x96xf32> to vector<1x96xf32>
    %34 = vector.broadcast %33 : vector<1x96xf32> to vector<8x96xf32>
    %35 = arith.addf %31, %34 : vector<8x96xf32>
    %36 = vector.extract_strided_slice %35 {offsets = [0, 0], sizes = [8, 16], strides = [1, 1]} : vector<8x96xf32> to vector<8x16xf32>
    %37 = vector.extract_strided_slice %35 {offsets = [0, 32], sizes = [8, 16], strides = [1, 1]} : vector<8x96xf32> to vector<8x16xf32>
    %38 = vector.extract_strided_slice %35 {offsets = [0, 64], sizes = [8, 16], strides = [1, 1]} : vector<8x96xf32> to vector<8x16xf32>
    %39 = vector.extract_strided_slice %35 {offsets = [0, 16], sizes = [8, 16], strides = [1, 1]} : vector<8x96xf32> to vector<8x16xf32>
    %40 = vector.extract_strided_slice %35 {offsets = [0, 48], sizes = [8, 16], strides = [1, 1]} : vector<8x96xf32> to vector<8x16xf32>
    %41 = vector.extract_strided_slice %35 {offsets = [0, 80], sizes = [8, 16], strides = [1, 1]} : vector<8x96xf32> to vector<8x16xf32>
    %42 = vector.shape_cast %36 : vector<8x16xf32> to vector<1x8x16xf32>
    %43 = vector.shape_cast %39 : vector<8x16xf32> to vector<1x8x16xf32>
    %44 = tpu.concatenate %42, %43 in 0 : vector<1x8x16xf32>, vector<1x8x16xf32> -> vector<2x8x16xf32>
    %cst_19 = arith.constant 2.500000e-01 : f32
    %45 = vector.broadcast %cst_19 : f32 to vector<2x8x16xf32>
    %46 = arith.mulf %44, %45 : vector<2x8x16xf32>
    %47 = arith.truncf %46 : vector<2x8x16xf32> to vector<2x8x16xbf16>
    %48 = vector.shape_cast %37 : vector<8x16xf32> to vector<1x8x16xf32>
    %49 = vector.shape_cast %40 : vector<8x16xf32> to vector<1x8x16xf32>
    %50 = tpu.concatenate %48, %49 in 0 : vector<1x8x16xf32>, vector<1x8x16xf32> -> vector<2x8x16xf32>
    %51 = arith.truncf %50 : vector<2x8x16xf32> to vector<2x8x16xbf16>
    %52 = vector.shape_cast %38 : vector<8x16xf32> to vector<1x8x16xf32>
    %53 = vector.shape_cast %41 : vector<8x16xf32> to vector<1x8x16xf32>
    %54 = tpu.concatenate %52, %53 in 0 : vector<1x8x16xf32>, vector<1x8x16xf32> -> vector<2x8x16xf32>
    %55 = arith.truncf %54 : vector<2x8x16xf32> to vector<2x8x16xbf16>
    "tpu.trace_start"() <{level = 10 : i32, message = "hqd,hkd->hqk"}> : () -> ()
    %cst_20 = arith.constant dense<0.000000e+00> : vector<2x8x8xf32>
    %56 = tpu.matmul %47, %51, %cst_20 {dimension_numbers = #tpu.dot_dimension_numbers<[2], [2], [1], [1], [0, 0, 0, 1, 1, 1], [0], [0]>} : vector<2x8x16xbf16>, vector<2x8x16xbf16>, vector<2x8x8xf32> -> vector<2x8x8xf32>
    "tpu.trace_stop"() : () -> ()
    %57 = tpu.iota {dimensions = array<i32: 2>} : vector<1x1x8xi32>
    %c5_i32 = arith.constant 5 : i32
    %58 = vector.broadcast %c5_i32 : i32 to vector<1x1x8xi32>
    %59 = arith.cmpi slt, %57, %58 : vector<1x1x8xi32>
    %cst_21 = arith.constant 0.000000e+00 : f32
    %cst_22 = arith.constant -1.000000e+30 : f32
    %60 = vector.broadcast %cst_21 : f32 to vector<1x1x8xf32>
    %61 = vector.broadcast %cst_22 : f32 to vector<1x1x8xf32>
    %62 = arith.select %59, %60, %61 : vector<1x1x8xi1>, vector<1x1x8xf32>
    %63 = vector.broadcast %62 : vector<1x1x8xf32> to vector<2x8x8xf32>
    %64 = arith.addf %56, %63 : vector<2x8x8xf32>
    %cst_23 = arith.constant dense<0xFF800000> : vector<2x8xf32>
    %65 = vector.multi_reduction <maximumf>, %64, %cst_23 [2] : vector<2x8x8xf32> to vector<2x8xf32>
    %66 = vector.shape_cast %65 : vector<2x8xf32> to vector<2x8x1xf32>
    %67 = vector.broadcast %66 : vector<2x8x1xf32> to vector<2x8x8xf32>
    %68 = arith.subf %64, %67 : vector<2x8x8xf32>
    %69 = math.exp %68 : vector<2x8x8xf32>
    %cst_24 = arith.constant dense<0.000000e+00> : vector<2x8xf32>
    %70 = vector.multi_reduction <add>, %69, %cst_24 [2] : vector<2x8x8xf32> to vector<2x8xf32>
    %71 = vector.shape_cast %70 : vector<2x8xf32> to vector<2x8x1xf32>
    %72 = tpu.reciprocal %71 {approx = true} : vector<2x8x1xf32> -> vector<2x8x1xf32>
    %73 = vector.broadcast %72 : vector<2x8x1xf32> to vector<2x8x8xf32>
    %74 = arith.mulf %69, %73 : vector<2x8x8xf32>
    %75 = arith.truncf %74 : vector<2x8x8xf32> to vector<2x8x8xbf16>
    "tpu.trace_start"() <{level = 10 : i32, message = "hqk,hkd->hqd"}> : () -> ()
    %cst_25 = arith.constant dense<0.000000e+00> : vector<2x8x16xf32>
    %76 = tpu.matmul %75, %55, %cst_25 {dimension_numbers = #tpu.dot_dimension_numbers<[2], [1], [1], [2], [0, 0, 0, 1, 1, 2], [0], [0]>} : vector<2x8x8xbf16>, vector<2x8x16xbf16>, vector<2x8x16xf32> -> vector<2x8x16xf32>
    "tpu.trace_stop"() : () -> ()
    %77 = vector.extract_strided_slice %76 {offsets = [0, 0, 0], sizes = [1, 8, 16], strides = [1, 1, 1]} : vector<2x8x16xf32> to vector<1x8x16xf32>
    %78 = vector.shape_cast %77 : vector<1x8x16xf32> to vector<8x16xf32>
    %79 = vector.extract_strided_slice %76 {offsets = [1, 0, 0], sizes = [1, 8, 16], strides = [1, 1, 1]} : vector<2x8x16xf32> to vector<1x8x16xf32>
    %80 = vector.shape_cast %79 : vector<1x8x16xf32> to vector<8x16xf32>
    %81 = tpu.concatenate %78, %80 in 1 : vector<8x16xf32>, vector<8x16xf32> -> vector<8x32xf32>
    %82 = arith.truncf %81 : vector<8x32xf32> to vector<8x32xbf16>
    %c0_26 = arith.constant 0 : index
    %c0_27 = arith.constant 0 : index
    %c0_28 = arith.constant 0 : index
    %83 = vector.load %arg7[%c0_26, %c0_27, %c0_28] : memref<1x32x32xbf16, #tpu.memory_space<vmem>>, vector<1x32x32xbf16>
    %84 = vector.shape_cast %83 : vector<1x32x32xbf16> to vector<32x32xbf16>
    %cst_29 = arith.constant dense<0.000000e+00> : vector<8x32xf32>
    %85 = tpu.matmul %82, %84, %cst_29 {dimension_numbers = #tpu.dot_dimension_numbers<[1], [0], [0], [1], [0, 0, 1, 1], [], []>} : vector<8x32xbf16>, vector<32x32xbf16>, vector<8x32xf32> -> vector<8x32xf32>
    %86 = arith.addf %3, %85 : vector<8x32xf32>
    %c0_30 = arith.constant 0 : index
    %c0_31 = arith.constant 0 : index
    %c0_32 = arith.constant 0 : index
    %87 = vector.load %arg8[%c0_30, %c0_31, %c0_32] : memref<1x1x32xf32, #tpu.memory_space<vmem>>, vector<1x1x32xf32>
    %88 = vector.shape_cast %87 : vector<1x1x32xf32> to vector<1x32xf32>
    %89 = vector.broadcast %88 : vector<1x32xf32> to vector<8x32xf32>
    %90 = arith.addf %86, %89 : vector<8x32xf32>
    %c0_33 = arith.constant 0 : index
    %c0_34 = arith.constant 0 : index
    %c0_35 = arith.constant 0 : index
    %91 = vector.load %arg9[%c0_33, %c0_34, %c0_35] : memref<1x1x32xf32, #tpu.memory_space<vmem>>, vector<1x1x32xf32>
    %92 = vector.shape_cast %91 : vector<1x1x32xf32> to vector<1x32xf32>
    %c0_36 = arith.constant 0 : index
    %c0_37 = arith.constant 0 : index
    %c0_38 = arith.constant 0 : index
    %93 = vector.load %arg10[%c0_36, %c0_37, %c0_38] : memref<1x1x32xf32, #tpu.memory_space<vmem>>, vector<1x1x32xf32>
    %94 = vector.shape_cast %93 : vector<1x1x32xf32> to vector<1x32xf32>
    %cst_39 = arith.constant dense<0.000000e+00> : vector<8xf32>
    %95 = vector.multi_reduction <add>, %90, %cst_39 [1] : vector<8x32xf32> to vector<8xf32>
    %96 = vector.shape_cast %95 : vector<8xf32> to vector<8x1xf32>
    %cst_40 = arith.constant 3.200000e+01 : f32
    %97 = vector.broadcast %cst_40 : f32 to vector<8x1xf32>
    %98 = arith.divf %96, %97 : vector<8x1xf32>
    %99 = vector.broadcast %98 : vector<8x1xf32> to vector<8x32xf32>
    %100 = arith.subf %90, %99 : vector<8x32xf32>
    %101 = arith.mulf %100, %100 : vector<8x32xf32>
    %cst_41 = arith.constant dense<0.000000e+00> : vector<8xf32>
    %102 = vector.multi_reduction <add>, %101, %cst_41 [1] : vector<8x32xf32> to vector<8xf32>
    %103 = vector.shape_cast %102 : vector<8xf32> to vector<8x1xf32>
    %cst_42 = arith.constant 3.200000e+01 : f32
    %104 = vector.broadcast %cst_42 : f32 to vector<8x1xf32>
    %105 = arith.divf %103, %104 : vector<8x1xf32>
    %cst_43 = arith.constant 9.99999996E-13 : f32
    %106 = vector.broadcast %cst_43 : f32 to vector<8x1xf32>
    %107 = arith.addf %105, %106 : vector<8x1xf32>
    %108 = math.rsqrt %107 : vector<8x1xf32>
    %109 = vector.broadcast %108 : vector<8x1xf32> to vector<8x32xf32>
    %110 = arith.mulf %100, %109 : vector<8x32xf32>
    %111 = vector.broadcast %92 : vector<1x32xf32> to vector<8x32xf32>
    %112 = arith.mulf %110, %111 : vector<8x32xf32>
    %113 = vector.broadcast %94 : vector<1x32xf32> to vector<8x32xf32>
    %114 = arith.addf %112, %113 : vector<8x32xf32>
    %115 = arith.truncf %114 : vector<8x32xf32> to vector<8x32xbf16>
    %c0_44 = arith.constant 0 : index
    %c0_45 = arith.constant 0 : index
    %c0_46 = arith.constant 0 : index
    %116 = vector.load %arg11[%c0_44, %c0_45, %c0_46] : memref<1x32x64xbf16, #tpu.memory_space<vmem>>, vector<1x32x64xbf16>
    %117 = vector.shape_cast %116 : vector<1x32x64xbf16> to vector<32x64xbf16>
    %cst_47 = arith.constant dense<0.000000e+00> : vector<8x64xf32>
    %118 = tpu.matmul %115, %117, %cst_47 {dimension_numbers = #tpu.dot_dimension_numbers<[1], [0], [0], [1], [0, 0, 1, 1], [], []>} : vector<8x32xbf16>, vector<32x64xbf16>, vector<8x64xf32> -> vector<8x64xf32>
    %c0_48 = arith.constant 0 : index
    %c0_49 = arith.constant 0 : index
    %c0_50 = arith.constant 0 : index
    %119 = vector.load %arg12[%c0_48, %c0_49, %c0_50] : memref<1x1x64xf32, #tpu.memory_space<vmem>>, vector<1x1x64xf32>
    %120 = vector.shape_cast %119 : vector<1x1x64xf32> to vector<1x64xf32>
    %121 = vector.broadcast %120 : vector<1x64xf32> to vector<8x64xf32>
    %122 = arith.addf %118, %121 : vector<8x64xf32>
    %123 = arith.mulf %122, %122 : vector<8x64xf32>
    %124 = arith.mulf %122, %123 : vector<8x64xf32>
    %cst_51 = arith.constant 4.471500e-02 : f32
    %125 = vector.broadcast %cst_51 : f32 to vector<8x64xf32>
    %126 = arith.mulf %125, %124 : vector<8x64xf32>
    %127 = arith.addf %122, %126 : vector<8x64xf32>
    %cst_52 = arith.constant 0.797884583 : f32
    %128 = vector.broadcast %cst_52 : f32 to vector<8x64xf32>
    %129 = arith.mulf %128, %127 : vector<8x64xf32>
    %130 = math.tanh %129 : vector<8x64xf32>
    %cst_53 = arith.constant 1.000000e+00 : f32
    %131 = vector.broadcast %cst_53 : f32 to vector<8x64xf32>
    %132 = arith.addf %131, %130 : vector<8x64xf32>
    %cst_54 = arith.constant 5.000000e-01 : f32
    %133 = vector.broadcast %cst_54 : f32 to vector<8x64xf32>
    %134 = arith.mulf %133, %132 : vector<8x64xf32>
    %135 = arith.mulf %122, %134 : vector<8x64xf32>
    %136 = arith.truncf %135 : vector<8x64xf32> to vector<8x64xbf16>
    %c0_55 = arith.constant 0 : index
    %c0_56 = arith.constant 0 : index
    %c0_57 = arith.constant 0 : index
    %137 = vector.load %arg13[%c0_55, %c0_56, %c0_57] : memref<1x64x32xbf16, #tpu.memory_space<vmem>>, vector<1x64x32xbf16>
    %138 = vector.shape_cast %137 : vector<1x64x32xbf16> to vector<64x32xbf16>
    %cst_58 = arith.constant dense<0.000000e+00> : vector<8x32xf32>
    %139 = tpu.matmul %136, %138, %cst_58 {dimension_numbers = #tpu.dot_dimension_numbers<[1], [0], [0], [1], [0, 0, 1, 1], [], []>} : vector<8x64xbf16>, vector<64x32xbf16>, vector<8x32xf32> -> vector<8x32xf32>
    %c0_59 = arith.constant 0 : index
    %c0_60 = arith.constant 0 : index
    %c0_61 = arith.constant 0 : index
    %140 = vector.load %arg14[%c0_59, %c0_60, %c0_61] : memref<1x1x32xf32, #tpu.memory_space<vmem>>, vector<1x1x32xf32>
    %141 = vector.shape_cast %140 : vector<1x1x32xf32> to vector<1x32xf32>
    %142 = vector.broadcast %141 : vector<1x32xf32> to vector<8x32xf32>
    %143 = arith.addf %139, %142 : vector<8x32xf32>
    %144 = arith.addf %90, %143 : vector<8x32xf32>
    %c0_62 = arith.constant 0 : index
    %c0_63 = arith.constant 0 : index
    %145 = vector.load %arg16[%c0_62, %c0_63] : memref<8x32xf32, #tpu.memory_space<vmem>>, vector<8x32xf32>
    tpu.vector_store %arg16[%c0_62, %c0_63], %144 {strides = array<i32>} : memref<8x32xf32, #tpu.memory_space<vmem>>, vector<8x32xf32>,
    %146 = vector.extract_strided_slice %144 {offsets = [0, 0], sizes = [1, 32], strides = [1, 1]} : vector<8x32xf32> to vector<1x32xf32>
    %c0_64 = arith.constant 0 : index
    %c0_65 = arith.constant 0 : index
    %c0_66 = arith.constant 0 : index
    %147 = vector.load %arg15[%c0_64, %c0_65, %c0_66] : memref<1x1x32xf32, #tpu.memory_space<vmem>>, vector<1x1x32xf32>
    %148 = vector.shape_cast %147 : vector<1x1x32xf32> to vector<1x32xf32>
    %149 = vector.shape_cast %146 : vector<1x32xf32> to vector<1x1x32xf32>
    tpu.vector_store %arg15[%c0_64, %c0_65, %c0_66], %149 {strides = array<i32>} : memref<1x1x32xf32, #tpu.memory_space<vmem>>, vector<1x1x32xf32>,
    return
  }
  func.func @transform_0(%arg0: i32, %arg1: i32) -> (i32, i32, i32) {
    %c0_i32 = arith.constant 0 : i32
    %c0_i32_0 = arith.constant 0 : i32
    %c0_i32_1 = arith.constant 0 : i32
    return %arg0, %c0_i32, %c0_i32_0 : i32, i32, i32
  }
  func.func @transform_1(%arg0: i32, %arg1: i32) -> (i32, i32, i32) {
    %c0_i32 = arith.constant 0 : i32
    %c0_i32_0 = arith.constant 0 : i32
    %c0_i32_1 = arith.constant 0 : i32
    return %arg1, %c0_i32, %c0_i32_0 : i32, i32, i32
  }
  func.func @transform_2(%arg0: i32, %arg1: i32) -> (i32, i32, i32) {
    %c0_i32 = arith.constant 0 : i32
    %c0_i32_0 = arith.constant 0 : i32
    %c0_i32_1 = arith.constant 0 : i32
    return %arg1, %c0_i32, %c0_i32_0 : i32, i32, i32
  }
  func.func @transform_3(%arg0: i32, %arg1: i32) -> (i32, i32, i32) {
    %c0_i32 = arith.constant 0 : i32
    %c0_i32_0 = arith.constant 0 : i32
    %c0_i32_1 = arith.constant 0 : i32
    return %arg1, %c0_i32, %c0_i32_0 : i32, i32, i32
  }
  func.func @transform_4(%arg0: i32, %arg1: i32) -> (i32, i32, i32) {
    %c0_i32 = arith.constant 0 : i32
    %c0_i32_0 = arith.constant 0 : i32
    %c0_i32_1 = arith.constant 0 : i32
    return %arg1, %c0_i32, %c0_i32_0 : i32, i32, i32
  }
  func.func @transform_5(%arg0: i32, %arg1: i32) -> (i32, i32, i32) {
    %c0_i32 = arith.constant 0 : i32
    %c0_i32_0 = arith.constant 0 : i32
    %c0_i32_1 = arith.constant 0 : i32
    return %arg1, %c0_i32, %c0_i32_0 : i32, i32, i32
  }
  func.func @transform_6(%arg0: i32, %arg1: i32) -> (i32, i32, i32) {
    %c0_i32 = arith.constant 0 : i32
    %c0_i32_0 = arith.constant 0 : i32
    %c0_i32_1 = arith.constant 0 : i32
    return %arg1, %c0_i32, %c0_i32_0 : i32, i32, i32
  }
  func.func @transform_7(%arg0: i32, %arg1: i32) -> (i32, i32, i32) {
    %c0_i32 = arith.constant 0 : i32
    %c0_i32_0 = arith.constant 0 : i32
    %c0_i32_1 = arith.constant 0 : i32
    return %arg1, %c0_i32, %c0_i32_0 : i32, i32, i32
  }
  func.func @transform_8(%arg0: i32, %arg1: i32) -> (i32, i32, i32) {
    %c0_i32 = arith.constant 0 : i32
    %c0_i32_0 = arith.constant 0 : i32
    %c0_i32_1 = arith.constant 0 : i32
    return %arg1, %c0_i32, %c0_i32_0 : i32, i32, i32
  }
  func.func @transform_9(%arg0: i32, %arg1: i32) -> (i32, i32, i32) {
    %c0_i32 = arith.constant 0 : i32
    %c0_i32_0 = arith.constant 0 : i32
    %c0_i32_1 = arith.constant 0 : i32
    return %arg1, %c0_i32, %c0_i32_0 : i32, i32, i32
  }
  func.func @transform_10(%arg0: i32, %arg1: i32) -> (i32, i32, i32) {
    %c0_i32 = arith.constant 0 : i32
    %c0_i32_0 = arith.constant 0 : i32
    %c0_i32_1 = arith.constant 0 : i32
    return %arg1, %c0_i32, %c0_i32_0 : i32, i32, i32
  }
  func.func @transform_11(%arg0: i32, %arg1: i32) -> (i32, i32, i32) {
    %c0_i32 = arith.constant 0 : i32
    %c0_i32_0 = arith.constant 0 : i32
    %c0_i32_1 = arith.constant 0 : i32
    return %arg1, %c0_i32, %c0_i32_0 : i32, i32, i32
  }
  func.func @transform_12(%arg0: i32, %arg1: i32) -> (i32, i32, i32) {
    %c0_i32 = arith.constant 0 : i32
    %c0_i32_0 = arith.constant 0 : i32
    %c0_i32_1 = arith.constant 0 : i32
    return %arg1, %c0_i32, %c0_i32_0 : i32, i32, i32
  }
  func.func @transform_13(%arg0: i32, %arg1: i32) -> (i32, i32, i32) {
    %c0_i32 = arith.constant 0 : i32
    %c0_i32_0 = arith.constant 0 : i32
    %c0_i32_1 = arith.constant 0 : i32
    return %arg0, %c0_i32, %c0_i32_0 : i32, i32, i32
  }
}

module attributes {stable_mosaic.version = 11 : i64} {
  func.func @head_kernel(%arg0: memref<2x32xf32, #tpu.memory_space<vmem>>, %arg1: memref<1x32xf32, #tpu.memory_space<vmem>>, %arg2: memref<1x32xf32, #tpu.memory_space<vmem>>, %arg3: memref<32x32xf32, #tpu.memory_space<vmem>>, %arg4: memref<1x32xf32, #tpu.memory_space<vmem>>, %arg5: memref<1x32xf32, #tpu.memory_space<vmem>>, %arg6: memref<1x32xf32, #tpu.memory_space<vmem>>, %arg7: memref<1x32xf32, #tpu.memory_space<vmem>>, %arg8: memref<1x32xf32, #tpu.memory_space<vmem>>, %arg9: memref<32x16xf32, #tpu.memory_space<vmem>>, %arg10: memref<1x16xf32, #tpu.memory_space<vmem>>, %arg11: memref<32x16xf32, #tpu.memory_space<vmem>>, %arg12: memref<1x16xf32, #tpu.memory_space<vmem>>, %arg13: memref<1x16xf32, #tpu.memory_space<vmem>>, %arg14: memref<1x16xf32, #tpu.memory_space<vmem>>, %arg15: memref<1x16xf32, #tpu.memory_space<vmem>>, %arg16: memref<1x16xf32, #tpu.memory_space<vmem>>, %arg17: memref<16x128xf32, #tpu.memory_space<vmem>>, %arg18: memref<1x128xf32, #tpu.memory_space<vmem>>, %arg19: memref<16x128xf32, #tpu.memory_space<vmem>>, %arg20: memref<1x128xf32, #tpu.memory_space<vmem>>, %arg21: memref<2x1xi32, #tpu.memory_space<vmem>>, %arg22: memref<2x12xf32, #tpu.memory_space<vmem>>, %arg23: memref<2x128xf32, #tpu.memory_space<vmem>>, %arg24: memref<2x128xf32, #tpu.memory_space<vmem>>, %arg25: memref<1x1xf32, #tpu.memory_space<vmem>>, %arg26: memref<1x1xf32, #tpu.memory_space<vmem>>) attributes {dimension_semantics = [], scalar_prefetch = 0 : i64, scratch_operands = 0 : i64, tpu.core_type = #tpu.core_type<tc>} {
    %c0 = arith.constant 0 : index
    %c0_0 = arith.constant 0 : index
    %0 = vector.load %arg0[%c0, %c0_0] : memref<2x32xf32, #tpu.memory_space<vmem>>, vector<2x32xf32>
    %cst = arith.constant dense<0.000000e+00> : vector<2xf32>
    %1 = vector.multi_reduction <add>, %0, %cst [1] : vector<2x32xf32> to vector<2xf32>
    %2 = vector.shape_cast %1 : vector<2xf32> to vector<2x1xf32>
    %cst_1 = arith.constant 3.200000e+01 : f32
    %3 = vector.broadcast %cst_1 : f32 to vector<2x1xf32>
    %4 = arith.divf %2, %3 : vector<2x1xf32>
    %5 = vector.broadcast %4 : vector<2x1xf32> to vector<2x32xf32>
    %6 = arith.subf %0, %5 : vector<2x32xf32>
    %7 = arith.mulf %6, %6 : vector<2x32xf32>
    %cst_2 = arith.constant dense<0.000000e+00> : vector<2xf32>
    %8 = vector.multi_reduction <add>, %7, %cst_2 [1] : vector<2x32xf32> to vector<2xf32>
    %9 = vector.shape_cast %8 : vector<2xf32> to vector<2x1xf32>
    %cst_3 = arith.constant 3.200000e+01 : f32
    %10 = vector.broadcast %cst_3 : f32 to vector<2x1xf32>
    %11 = arith.divf %9, %10 : vector<2x1xf32>
    %cst_4 = arith.constant 9.99999996E-13 : f32
    %12 = vector.broadcast %cst_4 : f32 to vector<2x1xf32>
    %13 = arith.addf %11, %12 : vector<2x1xf32>
    %14 = math.rsqrt %13 : vector<2x1xf32>
    %15 = vector.broadcast %14 : vector<2x1xf32> to vector<2x32xf32>
    %16 = arith.mulf %6, %15 : vector<2x32xf32>
    %c0_5 = arith.constant 0 : index
    %c0_6 = arith.constant 0 : index
    %17 = vector.load %arg1[%c0_5, %c0_6] : memref<1x32xf32, #tpu.memory_space<vmem>>, vector<1x32xf32>
    %18 = vector.broadcast %17 : vector<1x32xf32> to vector<2x32xf32>
    %19 = arith.mulf %16, %18 : vector<2x32xf32>
    %c0_7 = arith.constant 0 : index
    %c0_8 = arith.constant 0 : index
    %20 = vector.load %arg2[%c0_7, %c0_8] : memref<1x32xf32, #tpu.memory_space<vmem>>, vector<1x32xf32>
    %21 = vector.broadcast %20 : vector<1x32xf32> to vector<2x32xf32>
    %22 = arith.addf %19, %21 : vector<2x32xf32>
    %c0_9 = arith.constant 0 : index
    %c0_10 = arith.constant 0 : index
    %23 = vector.load %arg3[%c0_9, %c0_10] : memref<32x32xf32, #tpu.memory_space<vmem>>, vector<32x32xf32>
    %cst_11 = arith.constant dense<0.000000e+00> : vector<2x32xf32>
    %24 = tpu.matmul %22, %23, %cst_11 {dimension_numbers = #tpu.dot_dimension_numbers<[1], [0], [0], [1], [0, 0, 1, 1], [], []>} : vector<2x32xf32>, vector<32x32xf32>, vector<2x32xf32> -> vector<2x32xf32>
    %c0_12 = arith.constant 0 : index
    %c0_13 = arith.constant 0 : index
    %25 = vector.load %arg4[%c0_12, %c0_13] : memref<1x32xf32, #tpu.memory_space<vmem>>, vector<1x32xf32>
    %26 = vector.broadcast %25 : vector<1x32xf32> to vector<2x32xf32>
    %27 = arith.addf %24, %26 : vector<2x32xf32>
    %c0_14 = arith.constant 0 : index
    %c0_15 = arith.constant 0 : index
    %28 = vector.load %arg7[%c0_14, %c0_15] : memref<1x32xf32, #tpu.memory_space<vmem>>, vector<1x32xf32>
    %29 = vector.broadcast %28 : vector<1x32xf32> to vector<2x32xf32>
    %30 = arith.subf %27, %29 : vector<2x32xf32>
    %c0_16 = arith.constant 0 : index
    %c0_17 = arith.constant 0 : index
    %31 = vector.load %arg8[%c0_16, %c0_17] : memref<1x32xf32, #tpu.memory_space<vmem>>, vector<1x32xf32>
    %cst_18 = arith.constant 9.99999974E-6 : f32
    %32 = vector.broadcast %cst_18 : f32 to vector<1x32xf32>
    %33 = arith.addf %31, %32 : vector<1x32xf32>
    %34 = math.rsqrt %33 : vector<1x32xf32>
    %35 = vector.broadcast %34 : vector<1x32xf32> to vector<2x32xf32>
    %36 = arith.mulf %30, %35 : vector<2x32xf32>
    %c0_19 = arith.constant 0 : index
    %c0_20 = arith.constant 0 : index
    %37 = vector.load %arg5[%c0_19, %c0_20] : memref<1x32xf32, #tpu.memory_space<vmem>>, vector<1x32xf32>
    %38 = vector.broadcast %37 : vector<1x32xf32> to vector<2x32xf32>
    %39 = arith.mulf %36, %38 : vector<2x32xf32>
    %c0_21 = arith.constant 0 : index
    %c0_22 = arith.constant 0 : index
    %40 = vector.load %arg6[%c0_21, %c0_22] : memref<1x32xf32, #tpu.memory_space<vmem>>, vector<1x32xf32>
    %41 = vector.broadcast %40 : vector<1x32xf32> to vector<2x32xf32>
    %42 = arith.addf %39, %41 : vector<2x32xf32>
    %43 = math.tanh %42 : vector<2x32xf32>
    %c0_23 = arith.constant 0 : index
    %c0_24 = arith.constant 0 : index
    %44 = vector.load %arg9[%c0_23, %c0_24] : memref<32x16xf32, #tpu.memory_space<vmem>>, vector<32x16xf32>
    %cst_25 = arith.constant dense<0.000000e+00> : vector<2x16xf32>
    %45 = tpu.matmul %43, %44, %cst_25 {dimension_numbers = #tpu.dot_dimension_numbers<[1], [0], [0], [1], [0, 0, 1, 1], [], []>} : vector<2x32xf32>, vector<32x16xf32>, vector<2x16xf32> -> vector<2x16xf32>
    %c0_26 = arith.constant 0 : index
    %c0_27 = arith.constant 0 : index
    %46 = vector.load %arg10[%c0_26, %c0_27] : memref<1x16xf32, #tpu.memory_space<vmem>>, vector<1x16xf32>
    %47 = vector.broadcast %46 : vector<1x16xf32> to vector<2x16xf32>
    %48 = arith.addf %45, %47 : vector<2x16xf32>
    %c0_28 = arith.constant 0 : index
    %c0_29 = arith.constant 0 : index
    %49 = vector.load %arg11[%c0_28, %c0_29] : memref<32x16xf32, #tpu.memory_space<vmem>>, vector<32x16xf32>
    %cst_30 = arith.constant dense<0.000000e+00> : vector<2x16xf32>
    %50 = tpu.matmul %43, %49, %cst_30 {dimension_numbers = #tpu.dot_dimension_numbers<[1], [0], [0], [1], [0, 0, 1, 1], [], []>} : vector<2x32xf32>, vector<32x16xf32>, vector<2x16xf32> -> vector<2x16xf32>
    %c0_31 = arith.constant 0 : index
    %c0_32 = arith.constant 0 : index
    %51 = vector.load %arg12[%c0_31, %c0_32] : memref<1x16xf32, #tpu.memory_space<vmem>>, vector<1x16xf32>
    %52 = vector.broadcast %51 : vector<1x16xf32> to vector<2x16xf32>
    %53 = arith.addf %50, %52 : vector<2x16xf32>
    %c0_33 = arith.constant 0 : index
    %c0_34 = arith.constant 0 : index
    %54 = vector.load %arg15[%c0_33, %c0_34] : memref<1x16xf32, #tpu.memory_space<vmem>>, vector<1x16xf32>
    %55 = vector.broadcast %54 : vector<1x16xf32> to vector<2x16xf32>
    %56 = arith.subf %48, %55 : vector<2x16xf32>
    %c0_35 = arith.constant 0 : index
    %c0_36 = arith.constant 0 : index
    %57 = vector.load %arg16[%c0_35, %c0_36] : memref<1x16xf32, #tpu.memory_space<vmem>>, vector<1x16xf32>
    %cst_37 = arith.constant 9.99999974E-6 : f32
    %58 = vector.broadcast %cst_37 : f32 to vector<1x16xf32>
    %59 = arith.addf %57, %58 : vector<1x16xf32>
    %60 = math.rsqrt %59 : vector<1x16xf32>
    %61 = vector.broadcast %60 : vector<1x16xf32> to vector<2x16xf32>
    %62 = arith.mulf %56, %61 : vector<2x16xf32>
    %c0_38 = arith.constant 0 : index
    %c0_39 = arith.constant 0 : index
    %63 = vector.load %arg13[%c0_38, %c0_39] : memref<1x16xf32, #tpu.memory_space<vmem>>, vector<1x16xf32>
    %64 = vector.broadcast %63 : vector<1x16xf32> to vector<2x16xf32>
    %65 = arith.mulf %62, %64 : vector<2x16xf32>
    %c0_40 = arith.constant 0 : index
    %c0_41 = arith.constant 0 : index
    %66 = vector.load %arg14[%c0_40, %c0_41] : memref<1x16xf32, #tpu.memory_space<vmem>>, vector<1x16xf32>
    %67 = vector.broadcast %66 : vector<1x16xf32> to vector<2x16xf32>
    %68 = arith.addf %65, %67 : vector<2x16xf32>
    %69 = math.tanh %68 : vector<2x16xf32>
    %c0_42 = arith.constant 0 : index
    %c0_43 = arith.constant 0 : index
    %70 = vector.load %arg15[%c0_42, %c0_43] : memref<1x16xf32, #tpu.memory_space<vmem>>, vector<1x16xf32>
    %71 = vector.broadcast %70 : vector<1x16xf32> to vector<2x16xf32>
    %72 = arith.subf %53, %71 : vector<2x16xf32>
    %c0_44 = arith.constant 0 : index
    %c0_45 = arith.constant 0 : index
    %73 = vector.load %arg16[%c0_44, %c0_45] : memref<1x16xf32, #tpu.memory_space<vmem>>, vector<1x16xf32>
    %cst_46 = arith.constant 9.99999974E-6 : f32
    %74 = vector.broadcast %cst_46 : f32 to vector<1x16xf32>
    %75 = arith.addf %73, %74 : vector<1x16xf32>
    %76 = math.rsqrt %75 : vector<1x16xf32>
    %77 = vector.broadcast %76 : vector<1x16xf32> to vector<2x16xf32>
    %78 = arith.mulf %72, %77 : vector<2x16xf32>
    %c0_47 = arith.constant 0 : index
    %c0_48 = arith.constant 0 : index
    %79 = vector.load %arg13[%c0_47, %c0_48] : memref<1x16xf32, #tpu.memory_space<vmem>>, vector<1x16xf32>
    %80 = vector.broadcast %79 : vector<1x16xf32> to vector<2x16xf32>
    %81 = arith.mulf %78, %80 : vector<2x16xf32>
    %c0_49 = arith.constant 0 : index
    %c0_50 = arith.constant 0 : index
    %82 = vector.load %arg14[%c0_49, %c0_50] : memref<1x16xf32, #tpu.memory_space<vmem>>, vector<1x16xf32>
    %83 = vector.broadcast %82 : vector<1x16xf32> to vector<2x16xf32>
    %84 = arith.addf %81, %83 : vector<2x16xf32>
    %85 = math.tanh %84 : vector<2x16xf32>
    %c0_51 = arith.constant 0 : index
    %c0_52 = arith.constant 0 : index
    %86 = vector.load %arg17[%c0_51, %c0_52] : memref<16x128xf32, #tpu.memory_space<vmem>>, vector<16x128xf32>
    %cst_53 = arith.constant dense<0.000000e+00> : vector<2x128xf32>
    %87 = tpu.matmul %69, %86, %cst_53 {dimension_numbers = #tpu.dot_dimension_numbers<[1], [0], [0], [1], [0, 0, 1, 1], [], []>} : vector<2x16xf32>, vector<16x128xf32>, vector<2x128xf32> -> vector<2x128xf32>
    %c0_54 = arith.constant 0 : index
    %c0_55 = arith.constant 0 : index
    %88 = vector.load %arg18[%c0_54, %c0_55] : memref<1x128xf32, #tpu.memory_space<vmem>>, vector<1x128xf32>
    %89 = vector.broadcast %88 : vector<1x128xf32> to vector<2x128xf32>
    %90 = arith.addf %87, %89 : vector<2x128xf32>
    %c0_56 = arith.constant 0 : index
    %c0_57 = arith.constant 0 : index
    %91 = vector.load %arg19[%c0_56, %c0_57] : memref<16x128xf32, #tpu.memory_space<vmem>>, vector<16x128xf32>
    %cst_58 = arith.constant dense<0.000000e+00> : vector<2x128xf32>
    %92 = tpu.matmul %85, %91, %cst_58 {dimension_numbers = #tpu.dot_dimension_numbers<[1], [0], [0], [1], [0, 0, 1, 1], [], []>} : vector<2x16xf32>, vector<16x128xf32>, vector<2x128xf32> -> vector<2x128xf32>
    %c0_59 = arith.constant 0 : index
    %c0_60 = arith.constant 0 : index
    %93 = vector.load %arg20[%c0_59, %c0_60] : memref<1x128xf32, #tpu.memory_space<vmem>>, vector<1x128xf32>
    %94 = vector.broadcast %93 : vector<1x128xf32> to vector<2x128xf32>
    %95 = arith.addf %92, %94 : vector<2x128xf32>
    %c0_61 = arith.constant 0 : index
    %c0_62 = arith.constant 0 : index
    %96 = vector.load %arg23[%c0_61, %c0_62] : memref<2x128xf32, #tpu.memory_space<vmem>>, vector<2x128xf32>
    tpu.vector_store %arg23[%c0_61, %c0_62], %90 {strides = array<i32>} : memref<2x128xf32, #tpu.memory_space<vmem>>, vector<2x128xf32>,
    %c0_63 = arith.constant 0 : index
    %c0_64 = arith.constant 0 : index
    %97 = vector.load %arg24[%c0_63, %c0_64] : memref<2x128xf32, #tpu.memory_space<vmem>>, vector<2x128xf32>
    tpu.vector_store %arg24[%c0_63, %c0_64], %95 {strides = array<i32>} : memref<2x128xf32, #tpu.memory_space<vmem>>, vector<2x128xf32>,
    %98 = vector.extract_strided_slice %90 {offsets = [0, 0], sizes = [2, 10], strides = [1, 1]} : vector<2x128xf32> to vector<2x10xf32>
    %cst_65 = arith.constant dense<0xFF800000> : vector<2xf32>
    %99 = vector.multi_reduction <maximumf>, %98, %cst_65 [1] : vector<2x10xf32> to vector<2xf32>
    %100 = vector.shape_cast %99 : vector<2xf32> to vector<2x1xf32>
    %101 = vector.broadcast %100 : vector<2x1xf32> to vector<2x10xf32>
    %102 = arith.subf %98, %101 : vector<2x10xf32>
    %103 = math.exp %102 : vector<2x10xf32>
    %cst_66 = arith.constant dense<0.000000e+00> : vector<2xf32>
    %104 = vector.multi_reduction <add>, %103, %cst_66 [1] : vector<2x10xf32> to vector<2xf32>
    %105 = vector.shape_cast %104 : vector<2xf32> to vector<2x1xf32>
    %106 = math.log %105 : vector<2x1xf32>
    %107 = arith.addf %100, %106 : vector<2x1xf32>
    %108 = tpu.iota {dimensions = array<i32: 1>} : vector<2x10xi32>
    %c0_67 = arith.constant 0 : index
    %c0_68 = arith.constant 0 : index
    %109 = vector.load %arg21[%c0_67, %c0_68] : memref<2x1xi32, #tpu.memory_space<vmem>>, vector<2x1xi32>
    %110 = vector.broadcast %109 : vector<2x1xi32> to vector<2x10xi32>
    %111 = arith.cmpi eq, %108, %110 : vector<2x10xi32>
    %112 = arith.extui %111 : vector<2x10xi1> to vector<2x10xi32>
    %113 = arith.sitofp %112 : vector<2x10xi32> to vector<2x10xf32>
    %114 = arith.mulf %98, %113 : vector<2x10xf32>
    %cst_69 = arith.constant dense<0.000000e+00> : vector<2xf32>
    %115 = vector.multi_reduction <add>, %114, %cst_69 [1] : vector<2x10xf32> to vector<2xf32>
    %116 = vector.shape_cast %115 : vector<2xf32> to vector<2x1xf32>
    %117 = arith.subf %107, %116 : vector<2x1xf32>
    %cst_70 = arith.constant dense<0.000000e+00> : vector<1xf32>
    %118 = vector.multi_reduction <add>, %117, %cst_70 [0] : vector<2x1xf32> to vector<1xf32>
    %119 = vector.shape_cast %118 : vector<1xf32> to vector<1x1xf32>
    %cst_71 = arith.constant 2.000000e+00 : f32
    %120 = vector.broadcast %cst_71 : f32 to vector<1x1xf32>
    %121 = arith.divf %119, %120 : vector<1x1xf32>
    %c0_72 = arith.constant 0 : index
    %c0_73 = arith.constant 0 : index
    %122 = vector.load %arg25[%c0_72, %c0_73] : memref<1x1xf32, #tpu.memory_space<vmem>>, vector<1x1xf32>
    tpu.vector_store %arg25[%c0_72, %c0_73], %121 {strides = array<i32>} : memref<1x1xf32, #tpu.memory_space<vmem>>, vector<1x1xf32>,
    %123 = vector.extract_strided_slice %95 {offsets = [0, 0], sizes = [2, 12], strides = [1, 1]} : vector<2x128xf32> to vector<2x12xf32>
    %c0_74 = arith.constant 0 : index
    %c0_75 = arith.constant 0 : index
    %124 = vector.load %arg22[%c0_74, %c0_75] : memref<2x12xf32, #tpu.memory_space<vmem>>, vector<2x12xf32>
    %cst_76 = arith.constant 0.000000e+00 : f32
    %125 = vector.broadcast %cst_76 : f32 to vector<2x12xf32>
    %126 = arith.maximumf %123, %125 : vector<2x12xf32>
    %127 = arith.mulf %123, %124 : vector<2x12xf32>
    %128 = arith.subf %126, %127 : vector<2x12xf32>
    %129 = math.absf %123 : vector<2x12xf32>
    %cst_77 = arith.constant 0.000000e+00 : f32
    %130 = vector.broadcast %cst_77 : f32 to vector<2x12xf32>
    %131 = arith.subf %130, %129 : vector<2x12xf32>
    %132 = math.exp %131 : vector<2x12xf32>
    %cst_78 = arith.constant 1.000000e+00 : f32
    %133 = vector.broadcast %cst_78 : f32 to vector<2x12xf32>
    %134 = arith.addf %133, %132 : vector<2x12xf32>
    %135 = math.log %134 : vector<2x12xf32>
    %136 = arith.addf %128, %135 : vector<2x12xf32>
    %cst_79 = arith.constant dense<0.000000e+00> : vector<2xf32>
    %137 = vector.multi_reduction <add>, %136, %cst_79 [1] : vector<2x12xf32> to vector<2xf32>
    %138 = vector.shape_cast %137 : vector<2xf32> to vector<2x1xf32>
    %cst_80 = arith.constant dense<0.000000e+00> : vector<1xf32>
    %139 = vector.multi_reduction <add>, %138, %cst_80 [0] : vector<2x1xf32> to vector<1xf32>
    %140 = vector.shape_cast %139 : vector<1xf32> to vector<1x1xf32>
    %cst_81 = arith.constant 2.400000e+01 : f32
    %141 = vector.broadcast %cst_81 : f32 to vector<1x1xf32>
    %142 = arith.divf %140, %141 : vector<1x1xf32>
    %c0_82 = arith.constant 0 : index
    %c0_83 = arith.constant 0 : index
    %143 = vector.load %arg26[%c0_82, %c0_83] : memref<1x1xf32, #tpu.memory_space<vmem>>, vector<1x1xf32>
    tpu.vector_store %arg26[%c0_82, %c0_83], %142 {strides = array<i32>} : memref<1x1xf32, #tpu.memory_space<vmem>>, vector<1x1xf32>,
    return
  }
}

</mosaic_0001>

<bundles_post_ra>
// kernel: vit_multitask_forward.4
= control target key start
LH: loop header
LB: loop body
LE: loop exit
PB: predicated region body
PF: predicated region fallthrough
CT: control target
= control target key end

     0   :  { %s1478_s25 = smov 0   ;;  %s1480_s26 = smov 0   ;;  %s1684_s0 = inlined_call_operand.vmem [shape: f32[2,8,32], index: 0, kind: input, shape index: {}]   ;;  %s1685_s1 = inlined_call_operand.vmem [shape: f32[2,1,32], index: 1, kind: input, shape index: {}]   ;;  %s1686_s2 = inlined_call_operand.vmem [shape: f32[2,1,32], index: 2, kind: input, shape index: {}]   ;;  %s1687_s3 = inlined_call_operand.vmem [shape: bf16[2,32,96], index: 3, kind: input, shape index: {}]   ;;  %s1688_s4 = inlined_call_operand.vmem [shape: f32[2,1,96], index: 4, kind: input, shape index: {}]   ;;  %s1689_s5 = inlined_call_operand.vmem [shape: bf16[2,32,32], index: 5, kind: input, shape index: {}]   ;;  %s1690_s6 = inlined_call_operand.vmem [shape: f32[2,1,32], index: 6, kind: input, shape index: {}]   ;;  %s1691_s7 = inlined_call_operand.vmem [shape: f32[2,1,32], index: 7, kind: input, shape index: {}]   ;;  %s1692_s8 = inlined_call_operand.vmem [shape: f32[2,1,32], index: 8, kind: input, shape index: {}]   ;;  %s1693_s9 = inlined_call_operand.vmem [shape: bf16[2,32,64], index: 9, kind: input, shape index: {}]   ;;  %s1694_s10 = inlined_call_operand.vmem [shape: f32[2,1,64], index: 10, kind: input, shape index: {}]   ;;  %s1695_s11 = inlined_call_operand.vmem [shape: bf16[2,64,32], index: 11, kind: input, shape index: {}]   ;;  %s1696_s12 = inlined_call_operand.vmem [shape: f32[2,1,32], index: 12, kind: input, shape index: {}]   ;;  %s1697_s13 = inlined_call_operand.vmem [shape: f32[2,1,32], index: 13, kind: output, shape index: {}]  }
   0x1   :  { %1703 = sst [smem:[#allocation10_spill]] %s1684_s0  ;;  %s1482_s27 = smov 0  }
   0x2   :  { %1704 = sst [smem:[#allocation11_spill]] %s1687_s3  ;;  %s1484_s28 = smov 0  }
   0x3   :  { %1705 = sst [smem:[#allocation12_spill]] %s1689_s5  ;;  %s1486_s29 = smov 0  }
   0x4   :  { %1706 = sst [smem:[#allocation13_spill]] %s1695_s11 }
   0x5   :  { %1707 = sst [smem:[#allocation14_spill]] %s1696_s12 }
   0x6   :  { %1708 = sst [smem:[#allocation15_spill]] %s1697_s13 }
   0x7 LB: > { %1709 = sst [smem:[#allocation3_spill]] %s1384_s25  ;;  %s32_s30 = sadd.s32 1, %s1392_s27  ;;  %s1400_s29 = sphi %s1486_s29, %s23_s29   ;;  %s1396_s28 = sphi %s1484_s28, %s1736_s28   ;;  %s1392_s27 = sphi %s1482_s27, %s1735_s27   ;;  %s1388_s26 = sphi %s1480_s26, %s1734_s26   ;;  %s1384_s25 = sphi %s1478_s25, %s1733_s25  }
   0x8   : > { %1710 = sst [smem:[#allocation4_spill]] %s1392_s27  ;;  %s35_s14 = sadd.s32 1, %s1396_s28 }
   0x9   : > { %1711 = sst [smem:[#allocation5_spill]] %s1396_s28  ;;  %p33_p0 = scmp.ge.s32.totalorder %s32_s30, 2 }
   0xa   : > { %1712 = sst [smem:[#allocation6_spill]] %s1400_s29  ;;  %p1217_p1 = scmp.ge.s32.totalorder %s1400_s29, 1 }
   0xb   : > { %p502_p2 = scmp.lt.s32.totalorder %s1400_s29, 5  ;;  %s1738_s30 = smov (%p33_p0, %s32_s30), 0 }
   0xc   : > { %1713 = sst [smem:[#allocation7_spill]] %s1738_s30  ;;  %s1740_s14 = smov (!%p33_p0, %s35_s14), %s1396_s28 }
   0xd   : > { %p503_p3 = pnand %p1217_p1, %p502_p2  ;;  %p37_p4 = scmp.ge.s32.totalorder %s1740_s14, 2 }
   0xf   : > { %s1742_s14 = smov (%p37_p4, %s1740_s14), 0  ;;  %506 = sbr.rel (%p503_p3) target bundleno = 2005 (0x7d5), region = 72 }
  0x10   : > { %1714 = sst [smem:[#allocation8_spill]] %s1742_s14 }
  0x14   : > { %p587_p5 = scmp.lt.s32.totalorder %s1388_s26, 1  ;;  %p591_p6 = scmp.lt.s32.totalorder %s1384_s25, 1 }
  0x15   : > { %s1717_s0 = sld [smem:[#allocation10_spill]] }
  0x16   : > { %s1744_s26 = smov (!%p587_p5, %s1388_s26), 1  ;;  %s1718_s3 = sld [smem:[#allocation11_spill]] }
  0x17   : > { %1715 = sst [smem:[#allocation9_spill]] %s1744_s26  ;;  %s1218_s16 = sshll.u32 %s1744_s26, 3 }
  0x18   : > { %s1514_s15 = scalar_select %p591_p6, %s1384_s25, 1 }
  0x19   : > { %s1719_s5 = sld [smem:[#allocation12_spill]] }
  0x1a   : > { %s1278_s29 = sshll.u32 %s1514_s15, 4  ;;  %s626_s19 = scalar_lea.vmem %s1694_s10, %s1514_s15 }
  0x1b   : > { %s590_s22 = scalar_lea.vmem %s1717_s0, %s1218_s16  ;;  %s618_s0 = scalar_lea.vmem %s1692_s8, %s1514_s15 }
  0x1c   : > { %s1536_s12 = scalar_lea.vmem %s1718_s3, %s1278_s29  ;;  %s1562_s18 = scalar_lea.vmem %s1693_s9, %s1278_s29 }
  0x1d   : > { %s1720_s28 = sld [smem:[#allocation14_spill]] }
  0x1e   : > { %s1721_s14 = sld [smem:[#allocation13_spill]] }
  0x1f   : > { %s1545_s21 = scalar_lea.vmem %s1719_s5, %s1278_s29  ;;  %s1281_s5 = sshll.u32 %s1514_s15, 5 }
  0x20   : > { %s1722_s11 = sld [smem:[#allocation3_spill]] }
  0x23   : > { %s634_s13 = scalar_lea.vmem %s1720_s28, %s1514_s15 }
  0x24   : > { %s1576_s26 = scalar_lea.vmem %s1721_s14, %s1281_s5 }
  0x26   : > { %p1227_p7 = scmp.ne.s32.totalorder %s1722_s11, 0 }
  0x28   : > { %642 = sbr.rel (%p1227_p7) target bundleno = 47 (0x2f), region = 76 }
  0x2d   : > { %v643_v0 = vld [vmem:[%s590_s22] sm:$0xff]  ;;  %vm644_vm0 = vcmask 261120  }
  0x2e   : > { %645 = vst.msk [vmem:[#allocation2] sm:$0xff] %vm644_vm0, %v643_v0 }
  0x2f PF: > { %vm649_vm1 = vcmask 261120   ;;  %v1402_v3 = vmov 32.0   ;;  %v1283_v15 = vld [vmem:[%s1536_s12 + $0x8] sm:$0xff]  ;;  %v1282_v16 = vld [vmem:[%s1536_s12] sm:$0xff]  ;;  %s1723_s12 = scalar_lea.vmem %s1685_s1, %s1514_s15  ;;  %s1724_s22 = scalar_lea.vmem %s1686_s2, %s1514_s15  ;;  %vm743_vm6 = vcmask 130048   ;;  %v734_v52 = vlaneseq }
  0x30   : > { %1346 = vrcp.f32 %v1402_v3  ;;  %717 = vmatpush.bf16.msra.mxu0 %v1283_v15  ;;  %v1338_v26 = vld [vmem:[%s1723_s12] ss:$0 sm:$0xff]  ;;  %s1725_s17 = scalar_lea.vmem %s1688_s4, %s1514_s15  ;;  %s1403_s20 = smov 112   ;;  %v1405_v54 = vmov -1e+30   ;;  %vm787_vm8 = vcmask 64512  }
  0x31   : > { %v1339_v29 = vld [vmem:[%s1724_s22] ss:$0 sm:$0xff]  ;;  %s1404_s16 = smov 96   ;;  %v735_v53 = vand.u32 127, %v734_v52  ;;  %s1406_s23 = smov 64   ;;  %vm817_vm9 = vcmask 1043456  }
  0x32   : > { %v1340_v33 = vld [vmem:[%s1725_s17] ss:$0 sm:$0xff]  ;;  %s1407_s24 = smov 16   ;;  %s1726_s11 = scalar_lea.vmem %s1690_s6, %s1514_s15  ;;  %vm1014_vm13 = vcmask 523264   ;;  %vm1033_vm14 = vcmask 253952  }
  0x33   : > { %vm736_vm7 = vcmp.lt.s32.totalorder %v735_v53, 5  ;;  %s1727_s3 = scalar_lea.vmem %s1691_s7, %s1514_s15  ;;  %s1730_s17 = sld [smem:[#allocation15_spill]] }
  0x34   : > { %718 = vmatpush.bf16.msra.mxu0 %v1282_v16  ;;  %v737_v55 = vsel %vm736_vm7, 0.0, %v1405_v54 }
  0x35   : > { %v1579_v1 = vld [vmem:[#allocation2] sm:$0xff] }
  0x36   : > { %v650_v2 = vsel %vm649_vm1, %v1579_v1, 0.0  ;;  %v1347_v4 = vpop.eup %1346 }
  0x37   : > { %651 = vadd.xlane.f32.xlu0 %v650_v2  ;;  %v654_v5 = vmul.f32 32.0, %v1347_v4  ;;  %vm658_vm2 = vweird.f32 %v1347_v4 }
  0x39   : > { %v655_v6 = vsub.f32 1.0, %v654_v5 }
  0x3b   : > { %v656_v7 = vmul.f32 %v1347_v4, %v655_v6 }
  0x3d   : > { %v657_v8 = vadd.f32 %v1347_v4, %v656_v7 }
  0x3f   : > { %v1583_v9 = vsel %vm658_vm2, %v1347_v4, %v657_v8 }
  0xaa   : > { %v652_v10 = vpop.xlane.xlu0 %651 }
  0xab   : > { %v660_v11 = vmul.f32 %v1583_v9, %v652_v10 }
  0xad   : > { %v661_v12 = vsub.f32 %v1579_v1, %v660_v11 }
  0xaf   : > { %v662_v13 = vmul.f32 %v661_v12, %v661_v12 }
  0xb1   : > { %v663_v14 = vsel %vm649_vm1, %v662_v13, 0.0 }
  0xb2   : > { %664 = vadd.xlane.f32.xlu0 %v663_v14 }
 0x125   : > { %v665_v17 = vpop.xlane.xlu0 %664 }
 0x126   : > { %v666_v18 = vmul.f32 %v665_v17, %v1583_v9 }
 0x128   : > { %v667_v19 = vadd.f32 1e-12, %v666_v18 }
 0x12a   : > { %1348 = vrsqrt.f32 %v667_v19  ;;  %vm674_vm4 = vweird.f32 %v667_v19 }
 0x130   : > { %v1349_v20 = vpop.eup %1348 }
 0x131   : > { %v669_v21 = vmul.f32 %v1349_v20, %v667_v19  ;;  %vm675_vm3 = vweird.f32 %v1349_v20 }
 0x132   : > { %vm676_vm5 = vmor %vm674_vm4, %vm675_vm3 }
 0x133   : > { %v670_v22 = vmul.f32 %v1349_v20, %v669_v21 }
 0x135   : > { %v671_v23 = vmul.f32 0.5, %v670_v22 }
 0x137   : > { %v672_v24 = vsub.f32 1.5, %v671_v23 }
 0x139   : > { %v673_v25 = vmul.f32 %v1349_v20, %v672_v24 }
 0x13b   : > { %v677_v27 = vsel %vm676_vm5, %v1349_v20, %v673_v25 }
 0x13c   : > { %v678_v28 = vmul.f32 %v677_v27, %v661_v12  ;;  %v1284_v27 = vld [vmem:[%s1545_s21] sm:$0xff] }
 0x13e   : > { %v682_v30 = vmul.f32 %v1338_v26, %v678_v28  ;;  %v1285_v26 = vld [vmem:[%s1545_s21 + $0x8] sm:$0xff] }
 0x13f   : > { %886 = vmatpush.bf16.msrb.mxu0 %v1285_v26 }
 0x140   : > { %v686_v31 = vadd.f32 %v1339_v29, %v682_v30 }
 0x142   : > { %v687_v32 = vpack.c.bf16 %v686_v31, %v686_v31 }
 0x143   : > { %887 = vmatpush.bf16.msrb.mxu0 %v1284_v27 }
 0x144   : > { %1236 = vmatmul.msk.bf16.vlgmr.msra.gmra.mxu0 %vm649_vm1, %v687_v32 }
 0x1c1   : > { %v720_v34 = vpop.f32.mrf.mxu0 }
 0x1c2   : > { %v721_v35 = vadd.f32 %v1340_v33, %v720_v34  ;;  %v1341_v33 = vld [vmem:[%s1726_s11] ss:$0 sm:$0xff] }
 0x1c4   : > { %725 = vrot.lane.b32.xlu1 %v721_v35, %s1403_s20  ;;  %v732_v36 = vpack.c.bf16 %v721_v35, %v721_v35  ;;  %v728_v46 = vmul.f32 0.25, %v721_v35 }
 0x1c6   : > { %v739_v37 = vunpack.c.l.b16 %v732_v36  ;;  %v730_v47 = vpack.c.bf16 %v728_v46, %v728_v46 }
 0x1c8   : > { %v740_v39 = vpack.c.b16 %v739_v37, %v739_v37 }
 0x1c9   : > { %v722_v38 = vpop.f32.mrf.mxu0 }
 0x1cc   : > { %741 = vrot.lane.b32.xlu1 %v740_v39, %s1404_s16 }
 0x236   : > { %v726_v40 = vpop.permute.xlu1 %725 }
 0x237   : > { %v733_v41 = vpack.c.bf16 %v726_v40, %v726_v40  ;;  %v729_v50 = vmul.f32 0.25, %v726_v40 }
 0x239   : > { %v764_v42 = vunpack.c.l.b16 %v733_v41  ;;  %v731_v51 = vpack.c.bf16 %v729_v50, %v729_v50 }
 0x23b   : > { %v765_v43 = vpack.c.b16 %v764_v42, %v764_v42 }
 0x23d   : > { %766 = vrot.lane.b32.xlu2 %v765_v43, %s1404_s16 }
 0x23e   : > { %v742_v44 = vpop.permute.xlu1 %741 }
 0x23f   : > { %v748_v45 = vsel %vm743_vm6, %v742_v44, 0  ;;  %v1287_v44 = vld [vmem:[%s1562_s18 + $0x8] sm:$0xff] }
 0x240   : > { %757 = vmatpush.bf16.xpose.msra.mxu1 %v748_v45 }
 0x247   : > { %1237 = vmatmul.msk.bf16.vlgmr.msra.gmra.mxu1 %vm743_vm6, %v730_v47 }
 0x248   : > { %961 = vmatpush.bf16.msrb.mxu1 %v1287_v44 }
 0x297   : > { %v767_v48 = vpop.permute.xlu2 %766 }
 0x298   : > { %v772_v49 = vsel %vm743_vm6, %v767_v48, 0 }
 0x299   : > { %781 = vmatpush.bf16.xpose.msra.mxu2 %v772_v49 }
 0x2a0   : > { %1238 = vmatmul.msk.bf16.vlgmr.msra.gmra.mxu2 %vm743_vm6, %v731_v51 }
 0x2c4   : > { %v759_v56 = vpop.f32.mrf.mxu1 }
 0x2c5   : > { %v760_v57 = vadd.f32 %v759_v56, %v737_v55  ;;  %v1343_v56 = vld [vmem:[%s618_s0] ss:$0 sm:$0xff]  ;;  %s1728_s0 = sld [smem:[#allocation9_spill]] }
 0x2c7   : > { %v788_v58 = vsel %vm787_vm8, %v760_v57, -inf }
 0x2c8   : > { %789 = vmax.xlane.f32.xlu2 %v788_v58 }
 0x2cb   : > { %s1731_s20 = scalar_lea.vmem %s1730_s17, %s1728_s0 }
 0x2cc   : > { %v761_v59 = vpop.f32.mrf.mxu1 }
 0x2e0   : > { %834 = vrot.lane.b32.xlu2 %v765_v43, %s1406_s23 }
 0x323   : > { %v783_v60 = vpop.f32.mrf.mxu2 }
 0x324   : > { %v784_v61 = vadd.f32 %v783_v60, %v737_v55  ;;  %v1291_v60 = vld [vmem:[%s1576_s26 + $0x18] sm:$0xff] }
 0x325   : > { %1022 = vmatpush.bf16.msrb.mxu2 %v1291_v60 }
 0x326   : > { %v791_v62 = vsel %vm787_vm8, %v784_v61, -inf }
 0x327   : > { %792 = vmax.xlane.f32.xlu0 %v791_v62  ;;  %v1289_v62 = vld [vmem:[%s1576_s26 + $0x8] sm:$0xff] }
 0x32b   : > { %v785_v63 = vpop.f32.mrf.mxu2 }
 0x32c   : > { %v1288_v63 = vld [vmem:[%s1576_s26] sm:$0xff] }
 0x33b   : > { %812 = vrot.lane.b32.xlu0 %v740_v39, %s1406_s23  ;;  %v790_v0 = vpop.xlane.xlu2 %789 }
 0x33c   : > { %v794_v2 = vsub.f32 %v760_v57, %v790_v0  ;;  %v1344_v0 = vld [vmem:[%s626_s19] ss:$0 sm:$0xff] }
 0x33e   : > { %v796_v3 = vmul.f32 1.442695, %v794_v2 }
 0x340   : > { %1350 = vpow2.f32 %v796_v3 }
 0x343   : > { %v835_v12 = vpop.permute.xlu2 %834 }
 0x344   : > { %v840_v15 = vsel %vm817_vm9, %v835_v12, 0 }
 0x346   : > { %v1351_v4 = vpop.eup %1350 }
 0x347   : > { %v800_v5 = vsel %vm787_vm8, %v1351_v4, 0.0 }
 0x348   : > { %801 = vadd.xlane.f32.xlu1 %v800_v5 }
 0x39a   : > { %v793_v6 = vpop.xlane.xlu0 %792 }
 0x39b   : > { %v795_v7 = vsub.f32 %v784_v61, %v793_v6  ;;  %v1290_v61 = vld [vmem:[%s1576_s26 + $0x10] sm:$0xff] }
 0x39c   : > { %1023 = vmatpush.bf16.msrb.mxu2 %v1290_v61 }
 0x39d   : > { %v798_v8 = vmul.f32 1.442695, %v795_v7 }
 0x39f   : > { %1352 = vpow2.f32 %v798_v8 }
 0x3a0   : > { %1024 = vmatpush.bf16.msrb.mxu2 %v1289_v62 }
 0x3a4   : > { %1025 = vmatpush.bf16.msrb.mxu2 %v1288_v63 }
 0x3a5   : > { %v1353_v10 = vpop.eup %1352 }
 0x3a6   : > { %v803_v11 = vsel %vm787_vm8, %v1353_v10, 0.0 }
 0x3a7   : > { %804 = vadd.xlane.f32.xlu0 %v803_v11 }
 0x3ad   : > { %v813_v13 = vpop.permute.xlu0 %812 }
 0x3ae   : > { %v819_v14 = vsel %vm817_vm9, %v813_v13, 0 }
 0x3af   : > { %828 = vmatpush.bf16.msra.mxu3 %v819_v14 }
 0x3b3   : > { %849 = vmatpush.bf16.msrb.mxu3 %v840_v15 }
 0x3bb   : > { %v802_v16 = vpop.xlane.xlu1 %801 }
 0x3bc   : > { %1354 = vrcp.f32 %v802_v16  ;;  %v1345_v16 = vld [vmem:[%s634_s13] ss:$0 sm:$0xff] }
 0x3c2   : > { %v1355_v17 = vpop.eup %1354 }
 0x3c3   : > { %v808_v18 = vmul.f32 %v1355_v17, %v1351_v4 }
 0x3c5   : > { %v810_v19 = vpack.c.bf16 %v808_v18, %v808_v18 }
 0x3c7   : > { %1239 = vmatmul.msk.bf16.vlgmr.msra.gmra.mxu3 %vm787_vm8, %v810_v19 }
 0x41a   : > { %v805_v20 = vpop.xlane.xlu0 %804 }
 0x41b   : > { %1356 = vrcp.f32 %v805_v20 }
 0x421   : > { %v1357_v21 = vpop.eup %1356 }
 0x422   : > { %v809_v22 = vmul.f32 %v1357_v21, %v1353_v10 }
 0x424   : > { %v811_v23 = vpack.c.bf16 %v809_v22, %v809_v22 }
 0x426   : > { %1240 = vmatmul.msk.bf16.vlgmr.msrb.gmra.mxu3 %vm787_vm8, %v811_v23 }
 0x44a   : > { %v830_v24 = vpop.f32.mrf.mxu3 }
 0x452   : > { %v832_v25 = vpop.f32.mrf.mxu3 }
 0x4a9   : > { %v851_v28 = vpop.f32.mrf.mxu3 }
 0x4aa   : > { %856 = vrot.lane.b32.xlu1 %v851_v28, %s1407_s24 }
 0x4b1   : > { %v853_v29 = vpop.f32.mrf.mxu3 }
 0x51c   : > { %v857_v30 = vpop.permute.xlu1 %856 }
 0x51d   : > { %v859_v31 = vsel %vm743_vm6, %v830_v24, %v857_v30 }
 0x51e   : > { %v860_v32 = vpack.c.bf16 %v859_v31, %v859_v31 }
 0x520   : > { %1249 = vmatmul.msk.bf16.vlgmr.msrb.gmra.mxu0 %vm649_vm1, %v860_v32 }
 0x59d   : > { %v889_v34 = vpop.f32.mrf.mxu0 }
 0x59e   : > { %v893_v35 = vadd.f32 %v889_v34, %v1579_v1  ;;  %v1286_v1 = vld [vmem:[%s1562_s18] sm:$0xff] }
 0x59f   : > { %962 = vmatpush.bf16.msrb.mxu1 %v1286_v1 }
 0x5a0   : > { %v1627_v36 = vadd.f32 %v1341_v33, %v893_v35 }
 0x5a2   : > { %v901_v37 = vsel %vm649_vm1, %v1627_v36, 0.0 }
 0x5a3   : > { %902 = vadd.xlane.f32.xlu2 %v901_v37 }
 0x5a5   : > { %v891_v38 = vpop.f32.mrf.mxu0 }
 0x616   : > { %v903_v39 = vpop.xlane.xlu2 %902 }
 0x617   : > { %v904_v40 = vmul.f32 %v903_v39, %v1583_v9 }
 0x619   : > { %v905_v41 = vsub.f32 %v1627_v36, %v904_v40 }
 0x61b   : > { %v906_v42 = vmul.f32 %v905_v41, %v905_v41 }
 0x61d   : > { %v907_v43 = vsel %vm649_vm1, %v906_v42, 0.0 }
 0x61e   : > { %908 = vadd.xlane.f32.xlu1 %v907_v43 }
 0x691   : > { %v909_v45 = vpop.xlane.xlu1 %908 }
 0x692   : > { %v910_v46 = vmul.f32 %v909_v45, %v1583_v9  ;;  %v1342_v9 = vld [vmem:[%s1727_s3] ss:$0 sm:$0xff] }
 0x694   : > { %v911_v47 = vadd.f32 1e-12, %v910_v46 }
 0x696   : > { %1358 = vrsqrt.f32 %v911_v47  ;;  %vm918_vm11 = vweird.f32 %v911_v47 }
 0x69c   : > { %v1359_v48 = vpop.eup %1358 }
 0x69d   : > { %v913_v49 = vmul.f32 %v1359_v48, %v911_v47  ;;  %vm919_vm10 = vweird.f32 %v1359_v48 }
 0x69e   : > { %vm920_vm12 = vmor %vm918_vm11, %vm919_vm10 }
 0x69f   : > { %v914_v50 = vmul.f32 %v1359_v48, %v913_v49 }
 0x6a1   : > { %v915_v51 = vmul.f32 0.5, %v914_v50 }
 0x6a3   : > { %v916_v52 = vsub.f32 1.5, %v915_v51 }
 0x6a5   : > { %v917_v53 = vmul.f32 %v1359_v48, %v916_v52 }
 0x6a7   : > { %v921_v54 = vsel %vm920_vm12, %v1359_v48, %v917_v53 }
 0x6a8   : > { %v922_v55 = vmul.f32 %v921_v54, %v905_v41 }
 0x6aa   : > { %v926_v57 = vmul.f32 %v1342_v9, %v922_v55 }
 0x6ac   : > { %v930_v58 = vadd.f32 %v1343_v56, %v926_v57 }
 0x6ae   : > { %v931_v59 = vpack.c.bf16 %v930_v58, %v930_v58 }
 0x6b0   : > { %1258 = vmatmul.msk.bf16.vlgmr.msrb.gmra.mxu1 %vm649_vm1, %v931_v59 }
 0x72d   : > { %v964_v2 = vpop.f32.mrf.mxu1 }
 0x72e   : > { %v965_v3 = vadd.f32 %v1344_v0, %v964_v2 }
 0x730   : > { %v968_v4 = vmul.f32 %v965_v3, %v965_v3 }
 0x732   : > { %v969_v5 = vmul.f32 %v968_v4, %v965_v3 }
 0x734   : > { %v970_v6 = vmul.f32 0.044715, %v969_v5 }
 0x735   : > { %v966_v7 = vpop.f32.mrf.mxu1 }
 0x736   : > { %v971_v8 = vadd.f32 %v970_v6, %v965_v3 }
 0x738   : > { %v972_v10 = vmul.f32 0.7978846, %v971_v8 }
 0x73a   : > { %1360 = vtanh.f32 %v972_v10 }
 0x740   : > { %v1361_v11 = vpop.eup %1360 }
 0x741   : > { %v974_v12 = vadd.f32 1.0, %v1361_v11 }
 0x743   : > { %v975_v13 = vmul.f32 0.5, %v974_v12 }
 0x745   : > { %v976_v14 = vmul.f32 %v975_v13, %v965_v3 }
 0x747   : > { %v977_v15 = vpack.c.bf16 %v976_v14, %v976_v14 }
 0x749   : > { %1275 = vmatmul.msk.bf16.vlgmr.msrb.gmra.mxu2 %vm1014_vm13, %v977_v15 }
 0x7cc   : > { %v1027_v17 = vpop.f32.mrf.mxu2 }
 0x7cd   : > { %v1028_v18 = vadd.f32 %v1345_v16, %v1027_v17 }
 0x7cf   : > { %v1031_v19 = vadd.f32 %v1028_v18, %v1627_v36 }
 0x7d1   : > { %1032 = vst.msk [vmem:[#allocation2] sm:$0xff] %vm649_vm1, %v1031_v19 }
 0x7d2   : > { %1034 = vst.msk [vmem:[%s1731_s20] sm:$0x1] %vm1033_vm14, %v1031_v19 }
 0x7d4   : > { %v1029_v20 = vpop.f32.mrf.mxu2 }
 0x7d5 PF: > { %s1732_s16 = sld [smem:[#allocation6_spill]] }
 0x7d6   : > { %s1733_s25 = sld [smem:[#allocation4_spill]] }
 0x7d7   : > { %s1734_s26 = sld [smem:[#allocation5_spill]] }
 0x7d8   : > { %s1735_s27 = sld [smem:[#allocation7_spill]] }
 0x7d9   : > { %s1736_s28 = sld [smem:[#allocation8_spill]] }
 0x7db   : > { %s23_s29 = sadd.s32 1, %s1732_s16  }
 0x7dc   : > { %p20_p8 = scmp.ge.s32.totalorder %s23_s29, 6  }
 0x7de   :  { %22 = sbr.rel (!%p20_p8) target bundleno = 7 (0x7), region = 142 }

// kernel: vit_multitask_forward.5
= control target key start
LH: loop header
LB: loop body
LE: loop exit
PB: predicated region body
PF: predicated region fallthrough
CT: control target
= control target key end

     0   :  { %s915_s0 = inlined_call_operand.vmem [shape: f32[2,32], index: 0, kind: input, shape index: {}]   ;;  %s916_s1 = inlined_call_operand.vmem [shape: f32[1,32], index: 1, kind: input, shape index: {}]   ;;  %s917_s2 = inlined_call_operand.vmem [shape: f32[1,32], index: 2, kind: input, shape index: {}]   ;;  %s918_s3 = inlined_call_operand.vmem [shape: f32[32,32], index: 3, kind: input, shape index: {}]   ;;  %s919_s4 = inlined_call_operand.vmem [shape: f32[1,32], index: 4, kind: input, shape index: {}]   ;;  %s920_s5 = inlined_call_operand.vmem [shape: f32[1,32], index: 5, kind: input, shape index: {}]   ;;  %s921_s6 = inlined_call_operand.vmem [shape: f32[1,32], index: 6, kind: input, shape index: {}]   ;;  %s922_s7 = inlined_call_operand.vmem [shape: f32[1,32], index: 7, kind: input, shape index: {}]   ;;  %s923_s8 = inlined_call_operand.vmem [shape: f32[1,32], index: 8, kind: input, shape index: {}]   ;;  %s924_s9 = inlined_call_operand.vmem [shape: f32[32,16], index: 9, kind: input, shape index: {}]   ;;  %s925_s10 = inlined_call_operand.vmem [shape: f32[1,16], index: 10, kind: input, shape index: {}]   ;;  %s926_s11 = inlined_call_operand.vmem [shape: f32[32,16], index: 11, kind: input, shape index: {}]   ;;  %s927_s12 = inlined_call_operand.vmem [shape: f32[1,16], index: 12, kind: input, shape index: {}]   ;;  %s928_s13 = inlined_call_operand.vmem [shape: f32[1,16], index: 13, kind: input, shape index: {}]   ;;  %s929_s14 = inlined_call_operand.vmem [shape: f32[1,16], index: 14, kind: input, shape index: {}]   ;;  %s930_s15 = inlined_call_operand.vmem [shape: f32[1,16], index: 15, kind: input, shape index: {}]   ;;  %s931_s16 = inlined_call_operand.vmem [shape: f32[1,16], index: 16, kind: input, shape index: {}]   ;;  %s932_s17 = inlined_call_operand.vmem [shape: f32[16,128], index: 17, kind: input, shape index: {}]   ;;  %s933_s18 = inlined_call_operand.vmem [shape: f32[1,128], index: 18, kind: input, shape index: {}]   ;;  %s934_s19 = inlined_call_operand.vmem [shape: f32[16,128], index: 19, kind: input, shape index: {}]   ;;  %s935_s20 = inlined_call_operand.vmem [shape: f32[1,128], index: 20, kind: input, shape index: {}]   ;;  %s936_s21 = inlined_call_operand.vmem [shape: s32[2,1], index: 21, kind: input, shape index: {}]   ;;  %s937_s22 = inlined_call_operand.vmem [shape: f32[2,12], index: 22, kind: input, shape index: {}]   ;;  %s938_s23 = inlined_call_operand.hbm [shape: f32[2,128], index: 23, kind: output, shape index: {0}]   ;;  %s939_s24 = inlined_call_operand.hbm [shape: f32[2,128], index: 24, kind: output, shape index: {1}]   ;;  %s940_s25 = inlined_call_operand.hbm [shape: f32[1,1], index: 25, kind: output, shape index: {2}]   ;;  %s941_s26 = inlined_call_operand.hbm [shape: f32[1,1], index: 26, kind: output, shape index: {3}]  }
   0x1   :  { %944 = sst [smem:[#allocation12_spill]] %s915_s0 }
   0x2   :  { %945 = sst [smem:[#allocation13_spill]] %s916_s1 }
   0x3   :  { %946 = sst [smem:[#allocation14_spill]] %s917_s2 }
   0x4   :  { %947 = sst [smem:[#allocation15_spill]] %s918_s3 }
   0x5   :  { %948 = sst [smem:[#allocation16_spill]] %s919_s4 }
   0x6   :  { %949 = sst [smem:[#allocation17_spill]] %s920_s5 }
   0x7   :  { %950 = sst [smem:[#allocation18_spill]] %s921_s6 }
   0x8   :  { %951 = sst [smem:[#allocation19_spill]] %s922_s7 }
   0x9   :  { %952 = sst [smem:[#allocation20_spill]] %s923_s8 }
   0xa   :  { %953 = sst [smem:[#allocation21_spill]] %s924_s9 }
   0xb   :  { %954 = sst [smem:[#allocation22_spill]] %s925_s10 }
   0xc   :  { %32 = vsyncpa [#allocation3], 0 }
   0xd   :  { %33 = vsyncpa [#allocation5], 0  ;;  %s955_s7 = sld [smem:[#allocation12_spill]]  ;;  %vm82_vm0 = vcmask 254976  }
  0x13   :  { %v81_v0 = vld [vmem:[%s955_s7] sm:$0x3] }
  0x14   :  { %v83_v1 = vsel %vm82_vm0, %v81_v0, 0.0 }
  0x15   :  { %84 = vadd.xlane.f32.xlu0 %v83_v1 }
  0x16   :  { %34 = vsyncpa [#allocation8], 0  ;;  %v641_v2 = vmov 32.0   ;;  %s956_s4 = sld [smem:[#allocation15_spill]]  ;;  %vm130_vm5 = vcmask 261120   ;;  %v220_v38 = vld [vmem:[%s926_s11 + $0x18] sm:$0xff] }
  0x17   :  { %513 = vrcp.f32 %v641_v2  ;;  %s957_s1 = sld [smem:[#allocation13_spill]]  ;;  %237 = vmatpush.msra.mxu2 %v220_v38  ;;  %v219_v40 = vld [vmem:[%s926_s11 + $0x10] sm:$0xff]  ;;  %v218_v42 = vld [vmem:[%s926_s11 + $0x8] sm:$0xff]  ;;  %v217_v45 = vld [vmem:[%s926_s11] sm:$0xff]  ;;  %vm288_vm12 = vcmask 130048   ;;  %vm343_vm13 = vcmask 74752  }
  0x18   :  { %s958_s7 = sld [smem:[#allocation14_spill]]  ;;  %v250_v62 = vld [vmem:[%s931_s16] sm:$0x1]  ;;  %vm400_vm14 = vcmask 91136   ;;  %s645_s2 = smov [#allocation4]  }
  0x19   :  { %s960_s9 = sld [smem:[#allocation21_spill]]  ;;  %238 = vmatpush.msra.mxu2 %v219_v40  ;;  %v251_v63 = vadd.f32 1e-05, %v250_v62  ;;  %s427_s11 = sshll.u32 %s938_s23, 4  ;;  %s428_s11 = int_to_ptr.hbm [resolvable:$true] %s427_s11 }
  0x1a   :  { %s961_s5 = sld [smem:[#allocation16_spill]] }
  0x1b   :  { %239 = vmatpush.msra.mxu2 %v218_v42  ;;  %s962_s6 = sld [smem:[#allocation19_spill]]  ;;  %vm258_vm9 = vweird.f32 %v251_v63 }
  0x1c   :  { %v125_v14 = vld [vmem:[%s956_s4 + $0x18] sm:$0xff]  ;;  %v124_v15 = vld [vmem:[%s956_s4 + $0x10] sm:$0xff]  ;;  %v123_v16 = vld [vmem:[%s956_s4 + $0x8] sm:$0xff]  ;;  %s963_s27 = sld [smem:[#allocation17_spill]] }
  0x1d   :  { %v514_v3 = vpop.eup %513  ;;  %146 = vmatpush.msra.mxu0 %v125_v14  ;;  %v122_v17 = vld [vmem:[%s956_s4] sm:$0xff]  ;;  %s959_s4 = sld [smem:[#allocation20_spill]]  ;;  %240 = vmatpush.msra.mxu2 %v217_v45 }
  0x1e   :  { %v87_v4 = vmul.f32 32.0, %v514_v3  ;;  %vm91_vm1 = vweird.f32 %v514_v3  ;;  %v500_v27 = vld [vmem:[%s957_s1] ss:$0 sm:$0xff]  ;;  %s964_s28 = sld [smem:[#allocation18_spill]] }
  0x1f   :  { %147 = vmatpush.msra.mxu0 %v124_v15  ;;  %v501_v30 = vld [vmem:[%s958_s7] ss:$0 sm:$0xff]  ;;  %v189_v37 = vld [vmem:[%s960_s9 + $0x18] sm:$0xff]  ;;  %v188_v39 = vld [vmem:[%s960_s9 + $0x10] sm:$0xff] }
  0x20   :  { %v88_v5 = vsub.f32 1.0, %v87_v4  ;;  %209 = vmatpush.msra.mxu1 %v189_v37  ;;  %v187_v41 = vld [vmem:[%s960_s9 + $0x8] sm:$0xff]  ;;  %v186_v44 = vld [vmem:[%s960_s9] sm:$0xff]  ;;  %s646_s9 = smov [#allocation2]  }
  0x21   :  { %148 = vmatpush.msra.mxu0 %v123_v16  ;;  %v502_v49 = vld [vmem:[%s961_s5] ss:$0 sm:$0xff]  ;;  %s436_s5 = sshll.u32 %s645_s2, 4  ;;  %s425_s16 = sshll.u32 %s646_s9, 4  ;;  %s437_s5 = int_to_ptr.vmem [resolvable:$true] %s436_s5  ;;  %s426_s16 = int_to_ptr.vmem [resolvable:$true] %s425_s16 }
  0x22   :  { %v89_v6 = vmul.f32 %v514_v3, %v88_v5  ;;  %210 = vmatpush.msra.mxu1 %v188_v39  ;;  %v503_v51 = vld [vmem:[%s962_s6] ss:$0 sm:$0xff] }
  0x23   :  { %149 = vmatpush.msra.mxu0 %v122_v17  ;;  %v159_v33 = vld [vmem:[%s959_s4] sm:$0x1] }
  0x24   :  { %v90_v7 = vadd.f32 %v514_v3, %v89_v6  ;;  %v160_v34 = vadd.f32 1e-05, %v159_v33  ;;  %211 = vmatpush.msra.mxu1 %v187_v41  ;;  %v504_v56 = vld [vmem:[%s963_s27] ss:$0 sm:$0xff]  ;;  %v313_v6 = vld [vmem:[%s934_s19 + $0x8] sm:$0xff]  ;;  %s460_s27 = sshll.u32 %s941_s26, 4  ;;  %s461_s27 = int_to_ptr.hbm [resolvable:$true] %s460_s27 }
  0x25   :  { %v505_v58 = vld [vmem:[%s964_s28] ss:$0 sm:$0xff]  ;;  %s649_s26 = smov [#allocation6]   ;;  %s449_s28 = sshll.u32 %s940_s25, 4  ;;  %s450_s28 = int_to_ptr.hbm [resolvable:$true] %s449_s28 }
  0x26   :  { %v92_v8 = vsel %vm91_vm1, %v514_v3, %v90_v7  ;;  %212 = vmatpush.msra.mxu1 %v186_v44  ;;  %vm167_vm6 = vweird.f32 %v160_v34  ;;  %v283_v3 = vld [vmem:[%s932_s17 + $0x8] sm:$0xff]  ;;  %v282_v4 = vld [vmem:[%s932_s17] sm:$0xff]  ;;  %s965_s17 = sld [smem:[#allocation22_spill]] }
  0x27   :  { %306 = vmatpush.msra.mxu3 %v283_v3  ;;  %v312_v7 = vld [vmem:[%s934_s19] sm:$0xff]  ;;  %s447_s19 = sshll.u32 %s649_s26, 4  ;;  %s448_s19 = int_to_ptr.vmem [resolvable:$true] %s447_s19 }
  0x28   :  { %v508_v17 = vld [vmem:[%s928_s13] ss:$0 sm:$0xff] }
  0x29   :  { %307 = vmatpush.msra.mxu3 %v282_v4  ;;  %v358_v44 = vld [vmem:[%s936_s21] sm:$0x3] }
  0x2a   :  { %v388_v45 = vld [vmem:[%s937_s22] sm:$0x3]  ;;  %s438_s22 = sshll.u32 %s939_s24, 4  ;;  %s647_s24 = smov [#allocation7]   ;;  %s439_s22 = int_to_ptr.hbm [resolvable:$true] %s438_s22 }
  0x2b   :  { %335 = vmatpush.msrb.mxu3 %v313_v6 }
  0x2d   :  { %336 = vmatpush.msrb.mxu3 %v312_v7 }
  0x88   :  { %v85_v9 = vpop.xlane.xlu0 %84 }
  0x89   :  { %v93_v10 = vmul.f32 %v92_v8, %v85_v9 }
  0x8b   :  { %v94_v11 = vsub.f32 %v81_v0, %v93_v10  ;;  %v506_v10 = vld [vmem:[%s965_s17] ss:$0 sm:$0xff]  ;;  %s458_s17 = sshll.u32 %s647_s24, 4  ;;  %s459_s17 = int_to_ptr.vmem [resolvable:$true] %s458_s17 }
  0x8d   :  { %v95_v12 = vmul.f32 %v94_v11, %v94_v11 }
  0x8f   :  { %v96_v13 = vsel %vm82_vm0, %v95_v12, 0.0  ;;  %v507_v12 = vld [vmem:[%s930_s15] ss:$0 sm:$0xff]  ;;  %vm370_vm0 = vcmask 1041408  }
  0x90   :  { %97 = vadd.xlane.f32.xlu0 %v96_v13 }
 0x103   :  { %v98_v18 = vpop.xlane.xlu0 %97 }
 0x104   :  { %v99_v19 = vmul.f32 %v98_v18, %v92_v8  ;;  %v510_v18 = vld [vmem:[%s927_s12] ss:$0 sm:$0xff] }
 0x106   :  { %v100_v20 = vadd.f32 1e-12, %v99_v19 }
 0x108   :  { %515 = vrsqrt.f32 %v100_v20  ;;  %vm107_vm3 = vweird.f32 %v100_v20 }
 0x109   :  { %517 = vrsqrt.f32 %v160_v34 }
 0x10e   :  { %v516_v21 = vpop.eup %515 }
 0x10f   :  { %v102_v22 = vmul.f32 %v516_v21, %v100_v20  ;;  %vm108_vm2 = vweird.f32 %v516_v21  ;;  %v518_v35 = vpop.eup %517  ;;  %v509_v20 = vld [vmem:[%s929_s14] ss:$0 sm:$0xff] }
 0x110   :  { %vm109_vm4 = vmor %vm107_vm3, %vm108_vm2  ;;  %v162_v36 = vmul.f32 %v518_v35, %v160_v34  ;;  %vm168_vm7 = vweird.f32 %v518_v35  ;;  %vm386_vm2 = vcmask 0  }
 0x111   :  { %v103_v23 = vmul.f32 %v516_v21, %v102_v22  ;;  %vm169_vm8 = vmor %vm167_vm6, %vm168_vm7 }
 0x112   :  { %v163_v43 = vmul.f32 %v518_v35, %v162_v36  ;;  %v512_v36 = vld [vmem:[%s935_s20] ss:$0 sm:$0xff] }
 0x113   :  { %v104_v24 = vmul.f32 0.5, %v103_v23 }
 0x114   :  { %v164_v46 = vmul.f32 0.5, %v163_v43 }
 0x115   :  { %v105_v25 = vsub.f32 1.5, %v104_v24 }
 0x116   :  { %v165_v47 = vsub.f32 1.5, %v164_v46 }
 0x117   :  { %v106_v26 = vmul.f32 %v516_v21, %v105_v25 }
 0x118   :  { %v166_v48 = vmul.f32 %v518_v35, %v165_v47 }
 0x119   :  { %v110_v28 = vsel %vm109_vm4, %v516_v21, %v106_v26 }
 0x11a   :  { %v111_v29 = vmul.f32 %v110_v28, %v94_v11  ;;  %v170_v50 = vsel %vm169_vm8, %v518_v35, %v166_v48 }
 0x11b   :  { %v172_v54 = vperm.slane %v170_v50, 0 }
 0x11c   :  { %v116_v31 = vmul.f32 %v500_v27, %v111_v29 }
 0x11e   :  { %v121_v32 = vadd.f32 %v501_v30, %v116_v31  ;;  %v642_v31 = vmov 0  }
 0x11f   :  { %498 = vset.pattern.permute.xlu1 %v642_v31  ;;  %499 = vset.pattern.permute.xlu0 %v642_v31 }
 0x120   :  { %483 = vmatmul.msk.f32.vlgmr.msra.gmra.mxu0 %vm130_vm5, %v121_v32  ;;  %v511_v32 = vld [vmem:[%s933_s18] ss:$0 sm:$0xff] }
 0x19d   :  { %v151_v52 = vpop.f32.mrf.mxu0 }
 0x19e   :  { %v152_v53 = vadd.f32 %v502_v49, %v151_v52 }
 0x1a0   :  { %v158_v55 = vsub.f32 %v152_v53, %v503_v51 }
 0x1a2   :  { %v174_v57 = vmul.f32 %v172_v54, %v158_v55 }
 0x1a4   :  { %v179_v59 = vmul.f32 %v504_v56, %v174_v57 }
 0x1a6   :  { %v184_v60 = vadd.f32 %v505_v58, %v179_v59  ;;  %v356_v58 = vlaneseq  ;;  %v643_v59 = vmov 24.0  }
 0x1a8   :  { %519 = vtanh.f32 %v184_v60  ;;  %v357_v60 = vand.u32 127, %v356_v58 }
 0x1a9   :  { %521 = vrsqrt.f32 %v251_v63 }
 0x1ae   :  { %v520_v61 = vpop.eup %519 }
 0x1af   :  { %484 = vmatmul.msk.f32.vlgmr.msra.gmra.mxu1 %vm130_vm5, %v520_v61  ;;  %485 = vmatmul.msk.f32.vlgmr.msra.gmra.mxu2 %vm130_vm5, %v520_v61  ;;  %v522_v0 = vpop.eup %521 }
 0x1b0   :  { %v253_v1 = vmul.f32 %v522_v0, %v251_v63  ;;  %vm259_vm10 = vweird.f32 %v522_v0  ;;  %v644_v63 = vmov 0.0  }
 0x1b1   :  { %vm260_vm11 = vmor %vm258_vm9, %vm259_vm10 }
 0x1b2   :  { %v254_v2 = vmul.f32 %v522_v0, %v253_v1 }
 0x1b4   :  { %v255_v5 = vmul.f32 0.5, %v254_v2 }
 0x1b6   :  { %v256_v8 = vsub.f32 1.5, %v255_v5 }
 0x1b8   :  { %v257_v9 = vmul.f32 %v522_v0, %v256_v8 }
 0x1ba   :  { %v261_v11 = vsel %vm260_vm11, %v522_v0, %v257_v9 }
 0x1bb   :  { %v263_v15 = vperm.slane %v261_v11, 0 }
 0x22c   :  { %v214_v13 = vpop.f32.mrf.mxu1 }
 0x22d   :  { %v215_v14 = vadd.f32 %v506_v10, %v214_v13 }
 0x22f   :  { %v249_v16 = vsub.f32 %v215_v14, %v507_v12 }
 0x231   :  { %v265_v19 = vmul.f32 %v263_v15, %v249_v16 }
 0x232   :  { %v242_v21 = vpop.f32.mrf.mxu2 }
 0x233   :  { %v270_v22 = vmul.f32 %v508_v17, %v265_v19  ;;  %v243_v23 = vadd.f32 %v510_v18, %v242_v21  ;;  %v648_v18 = vmov 2.0  }
 0x235   :  { %v275_v24 = vadd.f32 %v509_v20, %v270_v22  ;;  %v277_v25 = vsub.f32 %v243_v23, %v507_v12 }
 0x237   :  { %523 = vtanh.f32 %v275_v24  ;;  %v278_v26 = vmul.f32 %v277_v25, %v263_v15 }
 0x239   :  { %v279_v27 = vmul.f32 %v508_v17, %v278_v26 }
 0x23b   :  { %v280_v28 = vadd.f32 %v509_v20, %v279_v27 }
 0x23d   :  { %v524_v29 = vpop.eup %523  ;;  %525 = vtanh.f32 %v280_v28 }
 0x23e   :  { %486 = vmatmul.msk.f32.vlgmr.msra.gmra.mxu3 %vm288_vm12, %v524_v29 }
 0x243   :  { %v526_v30 = vpop.eup %525 }
 0x246   :  { %487 = vmatmul.msk.f32.vlgmr.msrb.gmra.mxu3 %vm288_vm12, %v526_v30 }
 0x2c1   :  { %v309_v33 = vpop.f32.mrf.mxu3 }
 0x2c2   :  { %v310_v34 = vadd.f32 %v511_v32, %v309_v33 }
 0x2c4   :  { %341 = vst [vmem:[#allocation2] sm:$0x3] %v310_v34  ;;  %v344_v35 = vsel %vm343_vm13, %v310_v34, -inf }
 0x2c5   :  { %345 = vmax.xlane.f32.xlu1 %v344_v35  ;;  %430 = dma.vmem_to_hbm [thread:$0]  %s426_s16, 32, %s428_s11, [#allocation3]  }
 0x2c9   :  { %v338_v37 = vpop.f32.mrf.mxu3 }
 0x2ca   :  { %v339_v38 = vadd.f32 %v512_v36, %v338_v37 }
 0x2cc   :  { %v392_v39 = vand.u32 2147483647, %v339_v38  ;;  %342 = vst [vmem:[#allocation4] sm:$0x3] %v339_v38  ;;  %v389_v46 = vmax.f32 %v339_v38, 0.0  ;;  %v390_v47 = vmul.f32 %v388_v45, %v339_v38 }
 0x2cd   :  { %441 = dma.vmem_to_hbm [thread:$0]  %s437_s5, 32, %s439_s22, [#allocation5]  }
 0x2ce   :  { %v393_v40 = vsub.f32 0.0, %v392_v39  ;;  %v391_v49 = vsub.f32 %v389_v46, %v390_v47 }
 0x2d0   :  { %v394_v41 = vmul.f32 1.442695, %v393_v40 }
 0x2d2   :  { %527 = vpow2.f32 %v394_v41 }
 0x2d8   :  { %v528_v42 = vpop.eup %527 }
 0x2d9   :  { %v396_v43 = vadd.f32 1.0, %v528_v42 }
 0x2db   :  { %529 = vlog2.f32 %v396_v43 }
 0x2de   :  { %360 = vperm.xlu1 %498, %v358_v44  }
 0x2e1   :  { %v530_v48 = vpop.eup %529 }
 0x2e2   :  { %v398_v50 = vmul.f32 0.6931472, %v530_v48 }
 0x2e4   :  { %v399_v51 = vadd.f32 %v398_v50, %v391_v49 }
 0x2e6   :  { %v401_v52 = vsel %vm400_vm14, %v399_v51, 0.0 }
 0x2e7   :  { %402 = vadd.xlane.f32.xlu0 %v401_v52 }
 0x338   :  { %v893_v53 = vpop.xlane.xlu1 %345 }
 0x339   :  { %v347_v54 = vsub.f32 %v310_v34, %v893_v53 }
 0x33b   :  { %v348_v55 = vmul.f32 1.442695, %v347_v54 }
 0x33d   :  { %531 = vpow2.f32 %v348_v55 }
 0x33e   :  { %533 = vrcp.f32 %v643_v59 }
 0x343   :  { %v532_v56 = vpop.eup %531 }
 0x344   :  { %v350_v57 = vsel %vm343_vm13, %v532_v56, 0.0  ;;  %v534_v62 = vpop.eup %533 }
 0x345   :  { %351 = vadd.xlane.f32.xlu2 %v350_v57  ;;  %v412_v3 = vmul.f32 24.0, %v534_v62  ;;  %vm416_vm1 = vweird.f32 %v534_v62 }
 0x347   :  { %v413_v4 = vsub.f32 1.0, %v412_v3 }
 0x349   :  { %v414_v8 = vmul.f32 %v534_v62, %v413_v4 }
 0x34b   :  { %v415_v11 = vadd.f32 %v534_v62, %v414_v8 }
 0x34d   :  { %v417_v14 = vsel %vm416_vm1, %v534_v62, %v415_v11 }
 0x350   :  { %v361_v61 = vpop.permute.xlu1 %360 }
 0x351   :  { %vm362_vm15 = vcmp.eq.s32.totalorder %v357_v60, %v361_v61 }
 0x352   :  { %v488_v0 = vsel %vm362_vm15, 1.0, %v644_v63 }
 0x353   :  { %v365_v1 = vmul.f32 %v488_v0, %v310_v34 }
 0x355   :  { %v366_v2 = vsel %vm343_vm13, %v365_v1, 0.0 }
 0x356   :  { %367 = vadd.xlane.f32.xlu2 %v366_v2 }
 0x35a   :  { %v403_v5 = vpop.xlane.xlu0 %402 }
 0x35b   :  { %v404_v6 = vsel %vm370_vm0, %v403_v5, 0.0 }
 0x35c   :  { %v405_v7 = vrot.slane %v404_v6, 4 }
 0x35e   :  { %v406_v9 = vadd.f32 %v405_v7, %v404_v6 }
 0x360   :  { %v407_v10 = vrot.slane %v406_v9, 2 }
 0x362   :  { %v408_v12 = vadd.f32 %v407_v10, %v406_v9 }
 0x364   :  { %v409_v13 = vrot.slane %v408_v12, 1 }
 0x366   :  { %v410_v15 = vadd.f32 %v409_v13, %v408_v12 }
 0x368   :  { %v418_v16 = vmul.f32 %v417_v14, %v410_v15 }
 0x36a   :  { %419 = vst.msk [vmem:[#allocation7] sm:$0x1] %vm386_vm2, %v418_v16 }
 0x36b   :  { %463 = dma.vmem_to_hbm [thread:$0]  %s459_s17, 16, %s461_s27, [#allocation8]  }
 0x3b8   :  { %v352_v17 = vpop.xlane.xlu2 %351 }
 0x3b9   :  { %535 = vlog2.f32 %v352_v17 }
 0x3ba   :  { %537 = vrcp.f32 %v648_v18 }
 0x3bf   :  { %v536_v19 = vpop.eup %535 }
 0x3c0   :  { %v538_v20 = vpop.eup %537  ;;  %v354_v21 = vmul.f32 0.6931472, %v536_v19 }
 0x3c1   :  { %v379_v22 = vmul.f32 2.0, %v538_v20  ;;  %vm383_vm3 = vweird.f32 %v538_v20 }
 0x3c2   :  { %v355_v23 = vadd.f32 %v354_v21, %v893_v53 }
 0x3c3   :  { %v380_v26 = vsub.f32 1.0, %v379_v22 }
 0x3c5   :  { %v381_v29 = vmul.f32 %v538_v20, %v380_v26 }
 0x3c7   :  { %v382_v32 = vadd.f32 %v538_v20, %v381_v29 }
 0x3c9   :  { %v368_v24 = vpop.xlane.xlu2 %367  ;;  %v384_v35 = vsel %vm383_vm3, %v538_v20, %v382_v32 }
 0x3ca   :  { %v369_v25 = vsub.f32 %v355_v23, %v368_v24 }
 0x3cc   :  { %v371_v27 = vsel %vm370_vm0, %v369_v25, 0.0 }
 0x3cd   :  { %v372_v28 = vrot.slane %v371_v27, 4 }
 0x3cf   :  { %v373_v30 = vadd.f32 %v372_v28, %v371_v27 }
 0x3d1   :  { %v374_v31 = vrot.slane %v373_v30, 2 }
 0x3d3   :  { %v375_v33 = vadd.f32 %v374_v31, %v373_v30 }
 0x3d5   :  { %v376_v34 = vrot.slane %v375_v33, 1 }
 0x3d7   :  { %v377_v36 = vadd.f32 %v376_v34, %v375_v33 }
 0x3d9   :  { %v385_v37 = vmul.f32 %v384_v35, %v377_v36 }
 0x3db   :  { %387 = vst.msk [vmem:[#allocation6] sm:$0x1] %vm386_vm2, %v385_v37 }
 0x3dc   :  { %452 = dma.vmem_to_hbm [thread:$0]  %s448_s19, 16, %s450_s28, [#allocation5]  }
 0x3dd   :  { %635 = dma.done.wait [#allocation3], 32  }
 0x3de   :  { %636 = vsyncadd [#allocation3], 4294967264 }
 0x3df   :  { %637 = dma.done.wait [#allocation5], 48  }
 0x3e0   :  { %638 = vsyncadd [#allocation5], 4294967248 }
 0x3e1   :  { %639 = dma.done.wait [#allocation8], 16  }
 0x3e2   :  { %640 = vsyncadd [#allocation8], 4294967280 }
 0x3e3   :  { %480 = vsyncpa [#allocation3], 1 }
 0x3e4   :  { %481 = vsyncpa [#allocation5], 1 }
 0x3e5   :  { %482 = vsyncpa [#allocation8], 1 }

// kernel: vit_multitask_forward.3
= control target key start
LH: loop header
LB: loop body
LE: loop exit
PB: predicated region body
PF: predicated region fallthrough
CT: control target
= control target key end

     0   :  { %s544_s18 = smov 0   ;;  %s613_s0 = inlined_call_operand.vmem [shape: bf16[2,4,192], index: 0, kind: input, shape index: {}]   ;;  %s614_s1 = inlined_call_operand.vmem [shape: bf16[192,32], index: 1, kind: input, shape index: {}]   ;;  %s615_s2 = inlined_call_operand.vmem [shape: f32[1,32], index: 2, kind: input, shape index: {}]   ;;  %s616_s3 = inlined_call_operand.vmem [shape: f32[1,32], index: 3, kind: input, shape index: {}]   ;;  %s617_s4 = inlined_call_operand.vmem [shape: f32[5,32], index: 4, kind: input, shape index: {}]   ;;  %s618_s5 = inlined_call_operand.vmem [shape: f32[2,8,32], index: 5, kind: output, shape index: {}]  }
   0x1 LB: > { %s423_s19 = sadd.s32 4294967295, %s511_s18   ;;  %p427_p0 = scmp.ge.s32.totalorder %s511_s18, 1  ;;  %s511_s18 = sphi %s544_s18, %s15_s18  }
   0x2   : > { %p187_p1 = scmp.lt.s32.totalorder %s511_s18, 3 }
   0x4   : > { %p188_p2 = pnand %p427_p0, %p187_p1 }
   0x5   : > { %p214_p3 = scmp.lt.s32.totalorder (!%p188_p2), %s423_s19, 1 }
   0x6   : > { %191 = sbr.rel (%p188_p2) target bundleno = 177 (0xb1), region = 40 }
   0xb   : > { %v490_v0 = vld [vmem:[%s614_s1 + $0x38] sm:$0xff]  ;;  %v489_v2 = vld [vmem:[%s614_s1 + $0x30] sm:$0xff]  ;;  %s620_s19 = smov (!%p214_p3, %s423_s19), 1  ;;  %v488_v4 = vld [vmem:[%s614_s1 + $0x28] sm:$0xff]  ;;  %vm330_vm0 = vcmask 523264   ;;  %vm362_vm1 = vcmask 253952  }
   0xc   : > { %v494_v1 = vld [vmem:[%s614_s1 + $0x58] sm:$0xff]  ;;  %333 = vmatpush.bf16.msra.mxu0 %v490_v0  ;;  %v493_v3 = vld [vmem:[%s614_s1 + $0x50] sm:$0xff]  ;;  %s482_s28 = sshll.u32 %s620_s19, 2  ;;  %v492_v6 = vld [vmem:[%s614_s1 + $0x48] sm:$0xff]  ;;  %s430_s25 = sshll.u32 %s620_s19, 3  ;;  %vm368_vm2 = vcmask 256000  }
   0xd   : > { %350 = vmatpush.bf16.msra.mxu1 %v494_v1  ;;  %s218_s6 = scalar_lea.vmem %s613_s0, %s482_s28  ;;  %v487_v7 = vld [vmem:[%s614_s1 + $0x20] sm:$0xff]  ;;  %v486_v9 = vld [vmem:[%s614_s1 + $0x18] sm:$0xff]  ;;  %v485_v11 = vld [vmem:[%s614_s1 + $0x10] sm:$0xff]  ;;  %s222_s28 = scalar_lea.vmem %s618_s5, %s430_s25  ;;  %v513_v18 = vmov 0.0   ;;  %vm366_vm3 = vcmask 257024  }
   0xe   : > { %v224_v5 = vld [vmem:[%s218_s6] sm:$0xf]  ;;  %v484_v12 = vld [vmem:[%s614_s1 + $0x8] sm:$0xff]  ;;  %369 = vst.msk [vmem:[%s222_s28 + $0x5] sm:$0x7] %vm368_vm2, %v513_v18 }
   0xf   : > { %254 = vst [vmem:[#allocation1] ss:$4 sm:$0xff] %v224_v5  ;;  %v491_v8 = vld [vmem:[%s614_s1 + $0x40] sm:$0xff] }
  0x10   : > { %334 = vmatpush.bf16.msra.mxu0 %v489_v2  ;;  %v483_v13 = vld [vmem:[%s614_s1] sm:$0xff] }
  0x11   : > { %351 = vmatpush.bf16.msra.mxu1 %v493_v3  ;;  %v359_v15 = vld [vmem:[%s616_s3] sm:$0x1]  ;;  %v364_v24 = vld [vmem:[%s617_s4 + $0x1] sm:$0xf] }
  0x12   : > { %v360_v16 = vld [vmem:[%s617_s4] sm:$0x1] }
  0x13   : > { %v361_v17 = vadd.f32 %v360_v16, %v359_v15  ;;  %v504_v21 = vld [vmem:[%s615_s2] ss:$0 sm:$0xff] }
  0x14   : > { %335 = vmatpush.bf16.msra.mxu0 %v488_v4 }
  0x15   : > { %352 = vmatpush.bf16.msra.mxu1 %v492_v6  ;;  %363 = vst.msk [vmem:[%s222_s28] sm:$0x1] %vm362_vm1, %v361_v17 }
  0x16   : > { %v256_v10 = vld.sshfl [vmem:[#allocation1 + $0x8] sm:$0xff pattern:$0x73625140]  ;;  %v255_v14 = vld.sshfl [vmem:[#allocation1] sm:$0xff pattern:$0x73625140] }
  0x18   : > { %336 = vmatpush.bf16.msra.mxu0 %v487_v7 }
  0x19   : > { %353 = vmatpush.bf16.msra.mxu1 %v491_v8 }
  0x1c   : > { %337 = vmatpush.bf16.msra.mxu0 %v486_v9  ;;  %479 = vmatmul.msk.bf16.vlgmr.msra.gmra.mxu1 %vm330_vm0, %v256_v10 }
  0x20   : > { %338 = vmatpush.bf16.msra.mxu0 %v485_v11 }
  0x24   : > { %339 = vmatpush.bf16.msra.mxu0 %v484_v12 }
  0x28   : > { %340 = vmatpush.bf16.msra.mxu0 %v483_v13 }
  0x2b   : > { %341 = vmatmul.bf16.vlgmr.msra.gmra.mxu0 %v255_v14 }
  0x99   : > { %v355_v19 = vpop.f32.mrf.mxu1 }
  0xa1   : > { %v357_v20 = vpop.f32.mrf.mxu1 }
  0xa8   : > { %v342_v22 = vpop.f32.mrf.mxu0 }
  0xa9   : > { %v343_v23 = vadd.f32 %v504_v21, %v342_v22 }
  0xab   : > { %v356_v25 = vadd.f32 %v355_v19, %v343_v23 }
  0xad   : > { %v365_v26 = vadd.f32 %v364_v24, %v356_v25 }
  0xaf   : > { %367 = vst.msk [vmem:[%s222_s28 + $0x1] sm:$0xf] %vm366_vm3, %v365_v26 }
  0xb0   : > { %v344_v27 = vpop.f32.mrf.mxu0 }
  0xb1 PF: > { %s15_s18 = sadd.s32 1, %s511_s18  }
  0xb2   : > { %p12_p4 = scmp.ge.s32.totalorder %s15_s18, 4  }
  0xb4   :  { %14 = sbr.rel (!%p12_p4) target bundleno = 1 (0x1), region = 70 }

</bundles_post_ra>
